<compile_context>
chip_gen: v5e
topology: v5e:2x2
jax: 0.10.0
libtpu: 0.0.40
codegen_flags: <defaults>
</compile_context>

<pallas_src>
import functools

import jax
import jax.numpy as jnp
import numpy as np
from jax.experimental import pallas as pl
from jax.experimental.pallas import tpu as pltpu


# ----------------------------------------------------------------------------
# Pallas kernel: one time-chunk per grid step, recurrence state in scratch.
#   inputs  : x     (T, B, E)   embedded interactions for this chunk (time-major)
#             w_ih  (E, 4H)     input->gates weight (transposed)
#             w_hh  (H, 4H)     hidden->gates weight (transposed)
#             bias  (1, 4H)     b_ih + b_hh (fused)
#             w_sel (T, B, H)   W_out rows gathered at qshft
#             b_sel (T, B)      b_out gathered at qshft
#   output  : y     (T, B)      sigmoid(<h_t, w_sel_t> + b_sel_t)
#   scratch : h (B,H), c (B,H)      LSTM state (persists across chunks)
#             xp (T,B,4H)           precomputed input projection
#             hh (T,B,H)            per-step hidden states of this chunk
# ----------------------------------------------------------------------------
def _qdkt_kernel(x_ref, wih_ref, whh_ref, b_ref, wsel_ref, bsel_ref,
                 y_ref, h_sc, c_sc, xp_sc, hh_sc, *, hidden, chunk):
    H = hidden
    T = chunk
    B = h_sc.shape[0]

    @pl.when(pl.program_id(0) == 0)
    def _init():
        h_sc[...] = jnp.zeros_like(h_sc)
        c_sc[...] = jnp.zeros_like(c_sc)

    # loop-invariant weights / hoisted bias broadcast (JAX does not CSE these)
    w_ih = wih_ref[...]                                   # (E, 4H)
    w_hh = whh_ref[...]                                   # (H, 4H)
    bias_b = jnp.broadcast_to(b_ref[...], (B, 4 * H))     # (B, 4H)

    # ---- phase 1: non-recurrent input projection (off the critical path) ----
    # T independent (B,E)@(E,4H) MXU dots; bias folded in here once per step.
    def proj(t, carry):
        x_t = x_ref[t]                                    # (B, E)
        xp_sc[t] = jnp.dot(x_t.astype(w_ih.dtype), w_ih,
                           preferred_element_type=jnp.float32) + bias_b
        return carry

    jax.lax.fori_loop(0, T, proj, 0, unroll=min(T, 8))

    # ---- phase 2: serial recurrence (only h @ W_hh on the critical path) ----
    def step(t, carry):
        h_prev = h_sc[...]                                # (B, H)
        c_prev = c_sc[...]                                # (B, H)
        gates = xp_sc[t] + jnp.dot(h_prev.astype(w_hh.dtype), w_hh,
                                   preferred_element_type=jnp.float32)

        # NOTE: with H=32 these are sub-vreg lane slices; for production pick
        # H as a multiple of 128 so each gate slice is lane-tile aligned.
        i_g = jax.nn.sigmoid(gates[:, 0 * H:1 * H])
        f_g = jax.nn.sigmoid(gates[:, 1 * H:2 * H])
        g_g = jnp.tanh(gates[:, 2 * H:3 * H])
        o_g = jax.nn.sigmoid(gates[:, 3 * H:4 * H])

        c_new = f_g * c_prev + i_g * g_g
        h_new = o_g * jnp.tanh(c_new)
        c_sc[...] = c_new
        h_sc[...] = h_new
        hh_sc[t] = h_new
        return carry

    # keep the unroll window small even for long sequences (vreg budget)
    jax.lax.fori_loop(0, T, step, 0, unroll=min(T, 8))

    # ---- phase 3: batched output projection for the whole chunk --------------
    w_sel = wsel_ref[...].astype(jnp.float32)             # (T, B, H)
    logits = jnp.sum(hh_sc[...] * w_sel, axis=-1) + bsel_ref[...]   # (T, B)
    y_ref[...] = jax.nn.sigmoid(logits).astype(y_ref.dtype)


# ----------------------------------------------------------------------------
# Wrapper
# ----------------------------------------------------------------------------
def qdkt_forward(params, q, r, qshft, *, time_chunk=8, param_dtype=jnp.float32):
    """Pallas implementation of QDKTNet.forward (eval mode).

    q, r   : (B, L)  int32
    qshft  : (B, L-1) int32   next-question ids (data['qshft'])
    param_dtype : dtype of the MXU operands (f32 or bf16); accumulation,
                  LSTM state and gate math stay f32.
    returns: y (B, L-1) float32
    """
    num_q = params["num_q"]
    emb_table = params["emb"]                              # (2*num_q, E)
    E = emb_table.shape[1]
    H = params["w_hh"].shape[1]

    # --- glue: interaction id + embedding lookup (PyTorch nn.Embedding) ---
    x_ids = (q + num_q * r)[:, :-1]                        # (B, L-1)
    xemb = jnp.take(emb_table, x_ids, axis=0)              # (B, L-1, E)
    B, Lm1, _ = xemb.shape

    # time-chunk size: multiple of 8 (sublane tile); pad the time axis to it
    T = max(8, (time_chunk // 8) * 8)
    Lpad = ((Lm1 + T - 1) // T) * T
    n_chunks = Lpad // T

    # time-major activations / parameters
    x_tm = jnp.transpose(xemb, (1, 0, 2)).astype(param_dtype)           # (L-1, B, E)
    w_ih_t = params["w_ih"].T.astype(param_dtype)                       # (E, 4H)
    w_hh_t = params["w_hh"].T.astype(param_dtype)                       # (H, 4H)
    bias = (params["b_ih"] + params["b_hh"]).reshape(1, -1).astype(jnp.float32)

    # gather out-layer row / bias selected by qshft (replaces one-hot sum);
    # out-of-range ids are masked to 0.0 after the kernel (matches reference).
    qs = jnp.clip(qshft, 0, num_q - 1)
    w_sel = jnp.take(params["w_out"], qs, axis=0)                       # (B, L-1, H)
    b_sel = jnp.take(params["b_out"], qs, axis=0)                       # (B, L-1)
    w_sel_tm = jnp.transpose(w_sel, (1, 0, 2)).astype(param_dtype)      # (L-1, B, H)
    b_sel_tm = jnp.transpose(b_sel, (1, 0)).astype(jnp.float32)         # (L-1, B)

    pad = Lpad - Lm1
    if pad:
        x_tm = jnp.pad(x_tm, ((0, pad), (0, 0), (0, 0)))
        w_sel_tm = jnp.pad(w_sel_tm, ((0, pad), (0, 0), (0, 0)))
        b_sel_tm = jnp.pad(b_sel_tm, ((0, pad), (0, 0)))

    kernel = functools.partial(_qdkt_kernel, hidden=H, chunk=T)

    y_tm = pl.pallas_call(
        kernel,
        out_shape=jax.ShapeDtypeStruct((Lpad, B), jnp.float32),
        grid_spec=pltpu.PrefetchScalarGridSpec(
            num_scalar_prefetch=0,
            grid=(n_chunks,),                              # time chunks, sequential
            in_specs=[
                pl.BlockSpec((T, B, E), lambda t: (t, 0, 0)),        # x chunk
                pl.BlockSpec((E, 4 * H), lambda t: (0, 0)),          # W_ih^T
                pl.BlockSpec((H, 4 * H), lambda t: (0, 0)),          # W_hh^T
                pl.BlockSpec((1, 4 * H), lambda t: (0, 0)),          # fused bias
                pl.BlockSpec((T, B, H), lambda t: (t, 0, 0)),        # W_out[qshft] chunk
                pl.BlockSpec((T, B), lambda t: (t, 0)),              # b_out[qshft] chunk
            ],
            out_specs=pl.BlockSpec((T, B), lambda t: (t, 0)),        # lane-dense y
            scratch_shapes=[
                pltpu.VMEM((B, H), jnp.float32),                     # h state
                pltpu.VMEM((B, H), jnp.float32),                     # c state
                pltpu.VMEM((T, B, 4 * H), jnp.float32),              # x projection
                pltpu.VMEM((T, B, H), jnp.float32),                  # h history (chunk)
            ],
        ),
        compiler_params=pltpu.CompilerParams(
            dimension_semantics=("arbitrary",)),                     # recurrence
    )(x_tm, w_ih_t, w_hh_t, bias, w_sel_tm, b_sel_tm)

    y = jnp.transpose(y_tm[:Lm1], (1, 0))                            # (B, L-1)
    # match one-hot semantics: invalid / padded qshft ids contribute 0.0
    valid = (qshft >= 0) & (qshft < num_q)
    return jnp.where(valid, y, 0.0)


# ----------------------------------------------------------------------------
# Pure-JAX reference (mirrors the PyTorch forward) for correctness check
# ----------------------------------------------------------------------------
def qdkt_reference(params, q, r, qshft):
    num_q = params["num_q"]
    H = params["w_hh"].shape[1]
    x_ids = (q + num_q * r)[:, :-1]
    xemb = jnp.take(params["emb"], x_ids, axis=0)          # (B, L-1, E)
    B = xemb.shape[0]

    def step(carry, x_t):
        h, c = carry
        gates = (x_t @ params["w_ih"].T + params["b_ih"]
                 + h @ params["w_hh"].T + params["b_hh"])
        i = jax.nn.sigmoid(gates[:, 0 * H:1 * H])
        f = jax.nn.sigmoid(gates[:, 1 * H:2 * H])
        g = jnp.tanh(gates[:, 2 * H:3 * H])
        o = jax.nn.sigmoid(gates[:, 3 * H:4 * H])
        c_new = f * c + i * g
        h_new = o * jnp.tanh(c_new)
        return (h_new, c_new), h_new

    init = (jnp.zeros((B, H), jnp.float32), jnp.zeros((B, H), jnp.float32))
    _, h_seq = jax.lax.scan(step, init, jnp.transpose(xemb, (1, 0, 2)))
    h_seq = jnp.transpose(h_seq, (1, 0, 2))                 # (B, L-1, H)
    y = jax.nn.sigmoid(h_seq @ params["w_out"].T + params["b_out"])
    onehot = jax.nn.one_hot(qshft, num_q, dtype=y.dtype)
    return jnp.sum(y * onehot, axis=-1)


# ----------------------------------------------------------------------------
# Main
# ----------------------------------------------------------------------------
if __name__ == "__main__":
    num_q = 16
    emb_size = 32          # hidden_size == emb_size in QDKTNet
    hidden = emb_size
    B, L = 2, 17           # sequence length 17 -> 16 predicted steps -> 2 time chunks

    key = jax.random.PRNGKey(0)
    k_emb, k_wih, k_whh, k_bih, k_bhh, k_wo, k_bo, k_q, k_r = jax.random.split(key, 9)

    params = {
        "num_q": num_q,
        "emb": jax.random.normal(k_emb, (num_q * 2, emb_size), jnp.float32) * 0.5,
        "w_ih": jax.random.normal(k_wih, (4 * hidden, emb_size), jnp.float32) * 0.1,
        "w_hh": jax.random.normal(k_whh, (4 * hidden, hidden), jnp.float32) * 0.1,
        "b_ih": jax.random.normal(k_bih, (4 * hidden,), jnp.float32) * 0.1,
        "b_hh": jax.random.normal(k_bhh, (4 * hidden,), jnp.float32) * 0.1,
        "w_out": jax.random.normal(k_wo, (num_q, hidden), jnp.float32) * 0.1,
        "b_out": jax.random.normal(k_bo, (num_q,), jnp.float32) * 0.1,
    }

    q = jax.random.randint(k_q, (B, L), 0, num_q, jnp.int32)
    c = q  # concepts unused by the qaid forward path
    r = jax.random.randint(k_r, (B, L), 0, 2, jnp.int32)
    qshft = q[:, 1:]  # data['qshft'] : next-question ids, shape (B, L-1)

    y_ref = jax.block_until_ready(qdkt_reference(params, q, r, qshft))

    # f32 path: strict numerical check against the reference
    y = jax.block_until_ready(
        qdkt_forward(params, q, r, qshft, time_chunk=8, param_dtype=jnp.float32))
    np.testing.assert_allclose(np.asarray(y), np.asarray(y_ref), rtol=1e-5, atol=1e-5)

    # bf16 MXU-operand path (f32 accumulation / state), loose tolerance
    y_bf16 = jax.block_until_ready(
        qdkt_forward(params, q, r, qshft, time_chunk=8, param_dtype=jnp.bfloat16))
    np.testing.assert_allclose(np.asarray(y_bf16), np.asarray(y_ref), rtol=0, atol=5e-2)

    print("KERNEL_OK")
</pallas_src>

<mosaic_0001>
module attributes {stable_mosaic.version = 11 : i64} {
  func.func @_qdkt_kernel(%arg0: i32, %arg1: memref<8x2x32xf32, #tpu.memory_space<vmem>>, %arg2: memref<32x128xf32, #tpu.memory_space<vmem>>, %arg3: memref<32x128xf32, #tpu.memory_space<vmem>>, %arg4: memref<1x128xf32, #tpu.memory_space<vmem>>, %arg5: memref<8x2x32xf32, #tpu.memory_space<vmem>>, %arg6: memref<8x2xf32, #tpu.memory_space<vmem>>, %arg7: memref<8x2xf32, #tpu.memory_space<vmem>>, %arg8: memref<2x32xf32, #tpu.memory_space<vmem>>, %arg9: memref<2x32xf32, #tpu.memory_space<vmem>>, %arg10: memref<8x2x128xf32, #tpu.memory_space<vmem>>, %arg11: memref<8x2x32xf32, #tpu.memory_space<vmem>>) attributes {dimension_semantics = [#tpu.dimension_semantics<arbitrary>], iteration_bounds = array<i64: 2>, scalar_prefetch = 0 : i64, scratch_operands = 4 : i64, tpu.core_type = #tpu.core_type<tc>, window_params = [{transform_indices = @transform_0, window_bounds = array<i64: 8, 2, 32>}, {pipeline_mode = #tpu.pipeline_mode<synchronous>, transform_indices = @transform_1, window_bounds = array<i64: 32, 128>}, {pipeline_mode = #tpu.pipeline_mode<synchronous>, transform_indices = @transform_2, window_bounds = array<i64: 32, 128>}, {pipeline_mode = #tpu.pipeline_mode<synchronous>, transform_indices = @transform_3, window_bounds = array<i64: 1, 128>}, {transform_indices = @transform_4, window_bounds = array<i64: 8, 2, 32>}, {transform_indices = @transform_5, window_bounds = array<i64: 8, 2>}, {transform_indices = @transform_6, window_bounds = array<i64: 8, 2>}]} {
    %c0_i32 = arith.constant 0 : i32
    %0 = arith.cmpi eq, %arg0, %c0_i32 : i32
    %1 = arith.extui %0 : i1 to i32
    %c0_i32_0 = arith.constant 0 : i32
    %2 = arith.cmpi ne, %1, %c0_i32_0 : i32
    scf.if %2 {
      %cst_195 = arith.constant 0.000000e+00 : f32
      %396 = vector.broadcast %cst_195 : f32 to vector<2x32xf32>
      %c0_196 = arith.constant 0 : index
      %c0_197 = arith.constant 0 : index
      %397 = vector.load %arg8[%c0_196, %c0_197] : memref<2x32xf32, #tpu.memory_space<vmem>>, vector<2x32xf32>
      tpu.vector_store %arg8[%c0_196, %c0_197], %396 {strides = array<i32>} : memref<2x32xf32, #tpu.memory_space<vmem>>, vector<2x32xf32>,
      %cst_198 = arith.constant 0.000000e+00 : f32
      %398 = vector.broadcast %cst_198 : f32 to vector<2x32xf32>
      %c0_199 = arith.constant 0 : index
      %c0_200 = arith.constant 0 : index
      %399 = vector.load %arg9[%c0_199, %c0_200] : memref<2x32xf32, #tpu.memory_space<vmem>>, vector<2x32xf32>
      tpu.vector_store %arg9[%c0_199, %c0_200], %398 {strides = array<i32>} : memref<2x32xf32, #tpu.memory_space<vmem>>, vector<2x32xf32>,
    } else {
    }
    %c0 = arith.constant 0 : index
    %c0_1 = arith.constant 0 : index
    %3 = vector.load %arg2[%c0, %c0_1] : memref<32x128xf32, #tpu.memory_space<vmem>>, vector<32x128xf32>
    %c0_2 = arith.constant 0 : index
    %c0_3 = arith.constant 0 : index
    %4 = vector.load %arg3[%c0_2, %c0_3] : memref<32x128xf32, #tpu.memory_space<vmem>>, vector<32x128xf32>
    %c0_4 = arith.constant 0 : index
    %c0_5 = arith.constant 0 : index
    %5 = vector.load %arg4[%c0_4, %c0_5] : memref<1x128xf32, #tpu.memory_space<vmem>>, vector<1x128xf32>
    %6 = vector.shape_cast %5 : vector<1x128xf32> to vector<1x128xf32>
    %7 = vector.broadcast %6 : vector<1x128xf32> to vector<2x128xf32>
    %c0_i32_6 = arith.constant 0 : i32
    %8 = arith.index_cast %c0_i32_6 : i32 to index
    %c0_7 = arith.constant 0 : index
    %c0_8 = arith.constant 0 : index
    %9 = vector.load %arg1[%8, %c0_7, %c0_8] : memref<8x2x32xf32, #tpu.memory_space<vmem>>, vector<1x2x32xf32>
    %10 = vector.shape_cast %9 : vector<1x2x32xf32> to vector<2x32xf32>
    %cst = arith.constant dense<0.000000e+00> : vector<2x128xf32>
    %11 = tpu.matmul %10, %3, %cst {dimension_numbers = #tpu.dot_dimension_numbers<[1], [0], [0], [1], [0, 0, 1, 1], [], []>} : vector<2x32xf32>, vector<32x128xf32>, vector<2x128xf32> -> vector<2x128xf32>
    %12 = arith.addf %11, %7 : vector<2x128xf32>
    %13 = arith.index_cast %c0_i32_6 : i32 to index
    %c0_9 = arith.constant 0 : index
    %c0_10 = arith.constant 0 : index
    %14 = vector.load %arg10[%13, %c0_9, %c0_10] : memref<8x2x128xf32, #tpu.memory_space<vmem>>, vector<1x2x128xf32>
    %15 = vector.shape_cast %14 : vector<1x2x128xf32> to vector<2x128xf32>
    %16 = vector.shape_cast %12 : vector<2x128xf32> to vector<1x2x128xf32>
    tpu.vector_store %arg10[%13, %c0_9, %c0_10], %16 {strides = array<i32>} : memref<8x2x128xf32, #tpu.memory_space<vmem>>, vector<1x2x128xf32>,
    %c1_i32 = arith.constant 1 : i32
    %17 = arith.index_cast %c1_i32 : i32 to index
    %c0_11 = arith.constant 0 : index
    %c0_12 = arith.constant 0 : index
    %18 = vector.load %arg1[%17, %c0_11, %c0_12] : memref<8x2x32xf32, #tpu.memory_space<vmem>>, vector<1x2x32xf32>
    %19 = vector.shape_cast %18 : vector<1x2x32xf32> to vector<2x32xf32>
    %cst_13 = arith.constant dense<0.000000e+00> : vector<2x128xf32>
    %20 = tpu.matmul %19, %3, %cst_13 {dimension_numbers = #tpu.dot_dimension_numbers<[1], [0], [0], [1], [0, 0, 1, 1], [], []>} : vector<2x32xf32>, vector<32x128xf32>, vector<2x128xf32> -> vector<2x128xf32>
    %21 = arith.addf %20, %7 : vector<2x128xf32>
    %22 = arith.index_cast %c1_i32 : i32 to index
    %c0_14 = arith.constant 0 : index
    %c0_15 = arith.constant 0 : index
    %23 = vector.load %arg10[%22, %c0_14, %c0_15] : memref<8x2x128xf32, #tpu.memory_space<vmem>>, vector<1x2x128xf32>
    %24 = vector.shape_cast %23 : vector<1x2x128xf32> to vector<2x128xf32>
    %25 = vector.shape_cast %21 : vector<2x128xf32> to vector<1x2x128xf32>
    tpu.vector_store %arg10[%22, %c0_14, %c0_15], %25 {strides = array<i32>} : memref<8x2x128xf32, #tpu.memory_space<vmem>>, vector<1x2x128xf32>,
    %c2_i32 = arith.constant 2 : i32
    %26 = arith.index_cast %c2_i32 : i32 to index
    %c0_16 = arith.constant 0 : index
    %c0_17 = arith.constant 0 : index
    %27 = vector.load %arg1[%26, %c0_16, %c0_17] : memref<8x2x32xf32, #tpu.memory_space<vmem>>, vector<1x2x32xf32>
    %28 = vector.shape_cast %27 : vector<1x2x32xf32> to vector<2x32xf32>
    %cst_18 = arith.constant dense<0.000000e+00> : vector<2x128xf32>
    %29 = tpu.matmul %28, %3, %cst_18 {dimension_numbers = #tpu.dot_dimension_numbers<[1], [0], [0], [1], [0, 0, 1, 1], [], []>} : vector<2x32xf32>, vector<32x128xf32>, vector<2x128xf32> -> vector<2x128xf32>
    %30 = arith.addf %29, %7 : vector<2x128xf32>
    %31 = arith.index_cast %c2_i32 : i32 to index
    %c0_19 = arith.constant 0 : index
    %c0_20 = arith.constant 0 : index
    %32 = vector.load %arg10[%31, %c0_19, %c0_20] : memref<8x2x128xf32, #tpu.memory_space<vmem>>, vector<1x2x128xf32>
    %33 = vector.shape_cast %32 : vector<1x2x128xf32> to vector<2x128xf32>
    %34 = vector.shape_cast %30 : vector<2x128xf32> to vector<1x2x128xf32>
    tpu.vector_store %arg10[%31, %c0_19, %c0_20], %34 {strides = array<i32>} : memref<8x2x128xf32, #tpu.memory_space<vmem>>, vector<1x2x128xf32>,
    %c3_i32 = arith.constant 3 : i32
    %35 = arith.index_cast %c3_i32 : i32 to index
    %c0_21 = arith.constant 0 : index
    %c0_22 = arith.constant 0 : index
    %36 = vector.load %arg1[%35, %c0_21, %c0_22] : memref<8x2x32xf32, #tpu.memory_space<vmem>>, vector<1x2x32xf32>
    %37 = vector.shape_cast %36 : vector<1x2x32xf32> to vector<2x32xf32>
    %cst_23 = arith.constant dense<0.000000e+00> : vector<2x128xf32>
    %38 = tpu.matmul %37, %3, %cst_23 {dimension_numbers = #tpu.dot_dimension_numbers<[1], [0], [0], [1], [0, 0, 1, 1], [], []>} : vector<2x32xf32>, vector<32x128xf32>, vector<2x128xf32> -> vector<2x128xf32>
    %39 = arith.addf %38, %7 : vector<2x128xf32>
    %40 = arith.index_cast %c3_i32 : i32 to index
    %c0_24 = arith.constant 0 : index
    %c0_25 = arith.constant 0 : index
    %41 = vector.load %arg10[%40, %c0_24, %c0_25] : memref<8x2x128xf32, #tpu.memory_space<vmem>>, vector<1x2x128xf32>
    %42 = vector.shape_cast %41 : vector<1x2x128xf32> to vector<2x128xf32>
    %43 = vector.shape_cast %39 : vector<2x128xf32> to vector<1x2x128xf32>
    tpu.vector_store %arg10[%40, %c0_24, %c0_25], %43 {strides = array<i32>} : memref<8x2x128xf32, #tpu.memory_space<vmem>>, vector<1x2x128xf32>,
    %c4_i32 = arith.constant 4 : i32
    %44 = arith.index_cast %c4_i32 : i32 to index
    %c0_26 = arith.constant 0 : index
    %c0_27 = arith.constant 0 : index
    %45 = vector.load %arg1[%44, %c0_26, %c0_27] : memref<8x2x32xf32, #tpu.memory_space<vmem>>, vector<1x2x32xf32>
    %46 = vector.shape_cast %45 : vector<1x2x32xf32> to vector<2x32xf32>
    %cst_28 = arith.constant dense<0.000000e+00> : vector<2x128xf32>
    %47 = tpu.matmul %46, %3, %cst_28 {dimension_numbers = #tpu.dot_dimension_numbers<[1], [0], [0], [1], [0, 0, 1, 1], [], []>} : vector<2x32xf32>, vector<32x128xf32>, vector<2x128xf32> -> vector<2x128xf32>
    %48 = arith.addf %47, %7 : vector<2x128xf32>
    %49 = arith.index_cast %c4_i32 : i32 to index
    %c0_29 = arith.constant 0 : index
    %c0_30 = arith.constant 0 : index
    %50 = vector.load %arg10[%49, %c0_29, %c0_30] : memref<8x2x128xf32, #tpu.memory_space<vmem>>, vector<1x2x128xf32>
    %51 = vector.shape_cast %50 : vector<1x2x128xf32> to vector<2x128xf32>
    %52 = vector.shape_cast %48 : vector<2x128xf32> to vector<1x2x128xf32>
    tpu.vector_store %arg10[%49, %c0_29, %c0_30], %52 {strides = array<i32>} : memref<8x2x128xf32, #tpu.memory_space<vmem>>, vector<1x2x128xf32>,
    %c5_i32 = arith.constant 5 : i32
    %53 = arith.index_cast %c5_i32 : i32 to index
    %c0_31 = arith.constant 0 : index
    %c0_32 = arith.constant 0 : index
    %54 = vector.load %arg1[%53, %c0_31, %c0_32] : memref<8x2x32xf32, #tpu.memory_space<vmem>>, vector<1x2x32xf32>
    %55 = vector.shape_cast %54 : vector<1x2x32xf32> to vector<2x32xf32>
    %cst_33 = arith.constant dense<0.000000e+00> : vector<2x128xf32>
    %56 = tpu.matmul %55, %3, %cst_33 {dimension_numbers = #tpu.dot_dimension_numbers<[1], [0], [0], [1], [0, 0, 1, 1], [], []>} : vector<2x32xf32>, vector<32x128xf32>, vector<2x128xf32> -> vector<2x128xf32>
    %57 = arith.addf %56, %7 : vector<2x128xf32>
    %58 = arith.index_cast %c5_i32 : i32 to index
    %c0_34 = arith.constant 0 : index
    %c0_35 = arith.constant 0 : index
    %59 = vector.load %arg10[%58, %c0_34, %c0_35] : memref<8x2x128xf32, #tpu.memory_space<vmem>>, vector<1x2x128xf32>
    %60 = vector.shape_cast %59 : vector<1x2x128xf32> to vector<2x128xf32>
    %61 = vector.shape_cast %57 : vector<2x128xf32> to vector<1x2x128xf32>
    tpu.vector_store %arg10[%58, %c0_34, %c0_35], %61 {strides = array<i32>} : memref<8x2x128xf32, #tpu.memory_space<vmem>>, vector<1x2x128xf32>,
    %c6_i32 = arith.constant 6 : i32
    %62 = arith.index_cast %c6_i32 : i32 to index
    %c0_36 = arith.constant 0 : index
    %c0_37 = arith.constant 0 : index
    %63 = vector.load %arg1[%62, %c0_36, %c0_37] : memref<8x2x32xf32, #tpu.memory_space<vmem>>, vector<1x2x32xf32>
    %64 = vector.shape_cast %63 : vector<1x2x32xf32> to vector<2x32xf32>
    %cst_38 = arith.constant dense<0.000000e+00> : vector<2x128xf32>
    %65 = tpu.matmul %64, %3, %cst_38 {dimension_numbers = #tpu.dot_dimension_numbers<[1], [0], [0], [1], [0, 0, 1, 1], [], []>} : vector<2x32xf32>, vector<32x128xf32>, vector<2x128xf32> -> vector<2x128xf32>
    %66 = arith.addf %65, %7 : vector<2x128xf32>
    %67 = arith.index_cast %c6_i32 : i32 to index
    %c0_39 = arith.constant 0 : index
    %c0_40 = arith.constant 0 : index
    %68 = vector.load %arg10[%67, %c0_39, %c0_40] : memref<8x2x128xf32, #tpu.memory_space<vmem>>, vector<1x2x128xf32>
    %69 = vector.shape_cast %68 : vector<1x2x128xf32> to vector<2x128xf32>
    %70 = vector.shape_cast %66 : vector<2x128xf32> to vector<1x2x128xf32>
    tpu.vector_store %arg10[%67, %c0_39, %c0_40], %70 {strides = array<i32>} : memref<8x2x128xf32, #tpu.memory_space<vmem>>, vector<1x2x128xf32>,
    %c7_i32 = arith.constant 7 : i32
    %71 = arith.index_cast %c7_i32 : i32 to index
    %c0_41 = arith.constant 0 : index
    %c0_42 = arith.constant 0 : index
    %72 = vector.load %arg1[%71, %c0_41, %c0_42] : memref<8x2x32xf32, #tpu.memory_space<vmem>>, vector<1x2x32xf32>
    %73 = vector.shape_cast %72 : vector<1x2x32xf32> to vector<2x32xf32>
    %cst_43 = arith.constant dense<0.000000e+00> : vector<2x128xf32>
    %74 = tpu.matmul %73, %3, %cst_43 {dimension_numbers = #tpu.dot_dimension_numbers<[1], [0], [0], [1], [0, 0, 1, 1], [], []>} : vector<2x32xf32>, vector<32x128xf32>, vector<2x128xf32> -> vector<2x128xf32>
    %75 = arith.addf %74, %7 : vector<2x128xf32>
    %76 = arith.index_cast %c7_i32 : i32 to index
    %c0_44 = arith.constant 0 : index
    %c0_45 = arith.constant 0 : index
    %77 = vector.load %arg10[%76, %c0_44, %c0_45] : memref<8x2x128xf32, #tpu.memory_space<vmem>>, vector<1x2x128xf32>
    %78 = vector.shape_cast %77 : vector<1x2x128xf32> to vector<2x128xf32>
    %79 = vector.shape_cast %75 : vector<2x128xf32> to vector<1x2x128xf32>
    tpu.vector_store %arg10[%76, %c0_44, %c0_45], %79 {strides = array<i32>} : memref<8x2x128xf32, #tpu.memory_space<vmem>>, vector<1x2x128xf32>,
    %c8_i32 = arith.constant 8 : i32
    %c0_i32_46 = arith.constant 0 : i32
    %c0_47 = arith.constant 0 : index
    %c0_48 = arith.constant 0 : index
    %80 = vector.load %arg8[%c0_47, %c0_48] : memref<2x32xf32, #tpu.memory_space<vmem>>, vector<2x32xf32>
    %c0_49 = arith.constant 0 : index
    %c0_50 = arith.constant 0 : index
    %81 = vector.load %arg9[%c0_49, %c0_50] : memref<2x32xf32, #tpu.memory_space<vmem>>, vector<2x32xf32>
    %82 = arith.index_cast %c0_i32_46 : i32 to index
    %c0_51 = arith.constant 0 : index
    %c0_52 = arith.constant 0 : index
    %83 = vector.load %arg10[%82, %c0_51, %c0_52] : memref<8x2x128xf32, #tpu.memory_space<vmem>>, vector<1x2x128xf32>
    %84 = vector.shape_cast %83 : vector<1x2x128xf32> to vector<2x128xf32>
    %cst_53 = arith.constant dense<0.000000e+00> : vector<2x128xf32>
    %85 = tpu.matmul %80, %4, %cst_53 {dimension_numbers = #tpu.dot_dimension_numbers<[1], [0], [0], [1], [0, 0, 1, 1], [], []>} : vector<2x32xf32>, vector<32x128xf32>, vector<2x128xf32> -> vector<2x128xf32>
    %86 = arith.addf %84, %85 : vector<2x128xf32>
    %87 = vector.extract_strided_slice %86 {offsets = [0, 0], sizes = [2, 32], strides = [1, 1]} : vector<2x128xf32> to vector<2x32xf32>
    %88 = arith.negf %87 : vector<2x32xf32>
    %89 = math.exp %88 : vector<2x32xf32>
    %cst_54 = arith.constant 1.000000e+00 : f32
    %90 = vector.broadcast %cst_54 : f32 to vector<2x32xf32>
    %91 = arith.addf %90, %89 : vector<2x32xf32>
    %92 = arith.divf %90, %91 : vector<2x32xf32>
    %93 = vector.extract_strided_slice %86 {offsets = [0, 32], sizes = [2, 32], strides = [1, 1]} : vector<2x128xf32> to vector<2x32xf32>
    %94 = arith.negf %93 : vector<2x32xf32>
    %95 = math.exp %94 : vector<2x32xf32>
    %cst_55 = arith.constant 1.000000e+00 : f32
    %96 = vector.broadcast %cst_55 : f32 to vector<2x32xf32>
    %97 = arith.addf %96, %95 : vector<2x32xf32>
    %98 = arith.divf %96, %97 : vector<2x32xf32>
    %99 = vector.extract_strided_slice %86 {offsets = [0, 64], sizes = [2, 32], strides = [1, 1]} : vector<2x128xf32> to vector<2x32xf32>
    %100 = math.tanh %99 : vector<2x32xf32>
    %101 = vector.extract_strided_slice %86 {offsets = [0, 96], sizes = [2, 32], strides = [1, 1]} : vector<2x128xf32> to vector<2x32xf32>
    %102 = arith.negf %101 : vector<2x32xf32>
    %103 = math.exp %102 : vector<2x32xf32>
    %cst_56 = arith.constant 1.000000e+00 : f32
    %104 = vector.broadcast %cst_56 : f32 to vector<2x32xf32>
    %105 = arith.addf %104, %103 : vector<2x32xf32>
    %106 = arith.divf %104, %105 : vector<2x32xf32>
    %107 = arith.mulf %98, %81 : vector<2x32xf32>
    %108 = arith.mulf %92, %100 : vector<2x32xf32>
    %109 = arith.addf %107, %108 : vector<2x32xf32>
    %110 = math.tanh %109 : vector<2x32xf32>
    %111 = arith.mulf %106, %110 : vector<2x32xf32>
    %c0_57 = arith.constant 0 : index
    %c0_58 = arith.constant 0 : index
    %112 = vector.load %arg9[%c0_57, %c0_58] : memref<2x32xf32, #tpu.memory_space<vmem>>, vector<2x32xf32>
    tpu.vector_store %arg9[%c0_57, %c0_58], %109 {strides = array<i32>} : memref<2x32xf32, #tpu.memory_space<vmem>>, vector<2x32xf32>,
    %c0_59 = arith.constant 0 : index
    %c0_60 = arith.constant 0 : index
    %113 = vector.load %arg8[%c0_59, %c0_60] : memref<2x32xf32, #tpu.memory_space<vmem>>, vector<2x32xf32>
    tpu.vector_store %arg8[%c0_59, %c0_60], %111 {strides = array<i32>} : memref<2x32xf32, #tpu.memory_space<vmem>>, vector<2x32xf32>,
    %114 = arith.index_cast %c0_i32_46 : i32 to index
    %c0_61 = arith.constant 0 : index
    %c0_62 = arith.constant 0 : index
    %115 = vector.load %arg11[%114, %c0_61, %c0_62] : memref<8x2x32xf32, #tpu.memory_space<vmem>>, vector<1x2x32xf32>
    %116 = vector.shape_cast %115 : vector<1x2x32xf32> to vector<2x32xf32>
    %117 = vector.shape_cast %111 : vector<2x32xf32> to vector<1x2x32xf32>
    tpu.vector_store %arg11[%114, %c0_61, %c0_62], %117 {strides = array<i32>} : memref<8x2x32xf32, #tpu.memory_space<vmem>>, vector<1x2x32xf32>,
    %c1_i32_63 = arith.constant 1 : i32
    %c0_64 = arith.constant 0 : index
    %c0_65 = arith.constant 0 : index
    %118 = vector.load %arg8[%c0_64, %c0_65] : memref<2x32xf32, #tpu.memory_space<vmem>>, vector<2x32xf32>
    %c0_66 = arith.constant 0 : index
    %c0_67 = arith.constant 0 : index
    %119 = vector.load %arg9[%c0_66, %c0_67] : memref<2x32xf32, #tpu.memory_space<vmem>>, vector<2x32xf32>
    %120 = arith.index_cast %c1_i32_63 : i32 to index
    %c0_68 = arith.constant 0 : index
    %c0_69 = arith.constant 0 : index
    %121 = vector.load %arg10[%120, %c0_68, %c0_69] : memref<8x2x128xf32, #tpu.memory_space<vmem>>, vector<1x2x128xf32>
    %122 = vector.shape_cast %121 : vector<1x2x128xf32> to vector<2x128xf32>
    %cst_70 = arith.constant dense<0.000000e+00> : vector<2x128xf32>
    %123 = tpu.matmul %118, %4, %cst_70 {dimension_numbers = #tpu.dot_dimension_numbers<[1], [0], [0], [1], [0, 0, 1, 1], [], []>} : vector<2x32xf32>, vector<32x128xf32>, vector<2x128xf32> -> vector<2x128xf32>
    %124 = arith.addf %122, %123 : vector<2x128xf32>
    %125 = vector.extract_strided_slice %124 {offsets = [0, 0], sizes = [2, 32], strides = [1, 1]} : vector<2x128xf32> to vector<2x32xf32>
    %126 = arith.negf %125 : vector<2x32xf32>
    %127 = math.exp %126 : vector<2x32xf32>
    %cst_71 = arith.constant 1.000000e+00 : f32
    %128 = vector.broadcast %cst_71 : f32 to vector<2x32xf32>
    %129 = arith.addf %128, %127 : vector<2x32xf32>
    %130 = arith.divf %128, %129 : vector<2x32xf32>
    %131 = vector.extract_strided_slice %124 {offsets = [0, 32], sizes = [2, 32], strides = [1, 1]} : vector<2x128xf32> to vector<2x32xf32>
    %132 = arith.negf %131 : vector<2x32xf32>
    %133 = math.exp %132 : vector<2x32xf32>
    %cst_72 = arith.constant 1.000000e+00 : f32
    %134 = vector.broadcast %cst_72 : f32 to vector<2x32xf32>
    %135 = arith.addf %134, %133 : vector<2x32xf32>
    %136 = arith.divf %134, %135 : vector<2x32xf32>
    %137 = vector.extract_strided_slice %124 {offsets = [0, 64], sizes = [2, 32], strides = [1, 1]} : vector<2x128xf32> to vector<2x32xf32>
    %138 = math.tanh %137 : vector<2x32xf32>
    %139 = vector.extract_strided_slice %124 {offsets = [0, 96], sizes = [2, 32], strides = [1, 1]} : vector<2x128xf32> to vector<2x32xf32>
    %140 = arith.negf %139 : vector<2x32xf32>
    %141 = math.exp %140 : vector<2x32xf32>
    %cst_73 = arith.constant 1.000000e+00 : f32
    %142 = vector.broadcast %cst_73 : f32 to vector<2x32xf32>
    %143 = arith.addf %142, %141 : vector<2x32xf32>
    %144 = arith.divf %142, %143 : vector<2x32xf32>
    %145 = arith.mulf %136, %119 : vector<2x32xf32>
    %146 = arith.mulf %130, %138 : vector<2x32xf32>
    %147 = arith.addf %145, %146 : vector<2x32xf32>
    %148 = math.tanh %147 : vector<2x32xf32>
    %149 = arith.mulf %144, %148 : vector<2x32xf32>
    %c0_74 = arith.constant 0 : index
    %c0_75 = arith.constant 0 : index
    %150 = vector.load %arg9[%c0_74, %c0_75] : memref<2x32xf32, #tpu.memory_space<vmem>>, vector<2x32xf32>
    tpu.vector_store %arg9[%c0_74, %c0_75], %147 {strides = array<i32>} : memref<2x32xf32, #tpu.memory_space<vmem>>, vector<2x32xf32>,
    %c0_76 = arith.constant 0 : index
    %c0_77 = arith.constant 0 : index
    %151 = vector.load %arg8[%c0_76, %c0_77] : memref<2x32xf32, #tpu.memory_space<vmem>>, vector<2x32xf32>
    tpu.vector_store %arg8[%c0_76, %c0_77], %149 {strides = array<i32>} : memref<2x32xf32, #tpu.memory_space<vmem>>, vector<2x32xf32>,
    %152 = arith.index_cast %c1_i32_63 : i32 to index
    %c0_78 = arith.constant 0 : index
    %c0_79 = arith.constant 0 : index
    %153 = vector.load %arg11[%152, %c0_78, %c0_79] : memref<8x2x32xf32, #tpu.memory_space<vmem>>, vector<1x2x32xf32>
    %154 = vector.shape_cast %153 : vector<1x2x32xf32> to vector<2x32xf32>
    %155 = vector.shape_cast %149 : vector<2x32xf32> to vector<1x2x32xf32>
    tpu.vector_store %arg11[%152, %c0_78, %c0_79], %155 {strides = array<i32>} : memref<8x2x32xf32, #tpu.memory_space<vmem>>, vector<1x2x32xf32>,
    %c2_i32_80 = arith.constant 2 : i32
    %c0_81 = arith.constant 0 : index
    %c0_82 = arith.constant 0 : index
    %156 = vector.load %arg8[%c0_81, %c0_82] : memref<2x32xf32, #tpu.memory_space<vmem>>, vector<2x32xf32>
    %c0_83 = arith.constant 0 : index
    %c0_84 = arith.constant 0 : index
    %157 = vector.load %arg9[%c0_83, %c0_84] : memref<2x32xf32, #tpu.memory_space<vmem>>, vector<2x32xf32>
    %158 = arith.index_cast %c2_i32_80 : i32 to index
    %c0_85 = arith.constant 0 : index
    %c0_86 = arith.constant 0 : index
    %159 = vector.load %arg10[%158, %c0_85, %c0_86] : memref<8x2x128xf32, #tpu.memory_space<vmem>>, vector<1x2x128xf32>
    %160 = vector.shape_cast %159 : vector<1x2x128xf32> to vector<2x128xf32>
    %cst_87 = arith.constant dense<0.000000e+00> : vector<2x128xf32>
    %161 = tpu.matmul %156, %4, %cst_87 {dimension_numbers = #tpu.dot_dimension_numbers<[1], [0], [0], [1], [0, 0, 1, 1], [], []>} : vector<2x32xf32>, vector<32x128xf32>, vector<2x128xf32> -> vector<2x128xf32>
    %162 = arith.addf %160, %161 : vector<2x128xf32>
    %163 = vector.extract_strided_slice %162 {offsets = [0, 0], sizes = [2, 32], strides = [1, 1]} : vector<2x128xf32> to vector<2x32xf32>
    %164 = arith.negf %163 : vector<2x32xf32>
    %165 = math.exp %164 : vector<2x32xf32>
    %cst_88 = arith.constant 1.000000e+00 : f32
    %166 = vector.broadcast %cst_88 : f32 to vector<2x32xf32>
    %167 = arith.addf %166, %165 : vector<2x32xf32>
    %168 = arith.divf %166, %167 : vector<2x32xf32>
    %169 = vector.extract_strided_slice %162 {offsets = [0, 32], sizes = [2, 32], strides = [1, 1]} : vector<2x128xf32> to vector<2x32xf32>
    %170 = arith.negf %169 : vector<2x32xf32>
    %171 = math.exp %170 : vector<2x32xf32>
    %cst_89 = arith.constant 1.000000e+00 : f32
    %172 = vector.broadcast %cst_89 : f32 to vector<2x32xf32>
    %173 = arith.addf %172, %171 : vector<2x32xf32>
    %174 = arith.divf %172, %173 : vector<2x32xf32>
    %175 = vector.extract_strided_slice %162 {offsets = [0, 64], sizes = [2, 32], strides = [1, 1]} : vector<2x128xf32> to vector<2x32xf32>
    %176 = math.tanh %175 : vector<2x32xf32>
    %177 = vector.extract_strided_slice %162 {offsets = [0, 96], sizes = [2, 32], strides = [1, 1]} : vector<2x128xf32> to vector<2x32xf32>
    %178 = arith.negf %177 : vector<2x32xf32>
    %179 = math.exp %178 : vector<2x32xf32>
    %cst_90 = arith.constant 1.000000e+00 : f32
    %180 = vector.broadcast %cst_90 : f32 to vector<2x32xf32>
    %181 = arith.addf %180, %179 : vector<2x32xf32>
    %182 = arith.divf %180, %181 : vector<2x32xf32>
    %183 = arith.mulf %174, %157 : vector<2x32xf32>
    %184 = arith.mulf %168, %176 : vector<2x32xf32>
    %185 = arith.addf %183, %184 : vector<2x32xf32>
    %186 = math.tanh %185 : vector<2x32xf32>
    %187 = arith.mulf %182, %186 : vector<2x32xf32>
    %c0_91 = arith.constant 0 : index
    %c0_92 = arith.constant 0 : index
    %188 = vector.load %arg9[%c0_91, %c0_92] : memref<2x32xf32, #tpu.memory_space<vmem>>, vector<2x32xf32>
    tpu.vector_store %arg9[%c0_91, %c0_92], %185 {strides = array<i32>} : memref<2x32xf32, #tpu.memory_space<vmem>>, vector<2x32xf32>,
    %c0_93 = arith.constant 0 : index
    %c0_94 = arith.constant 0 : index
    %189 = vector.load %arg8[%c0_93, %c0_94] : memref<2x32xf32, #tpu.memory_space<vmem>>, vector<2x32xf32>
    tpu.vector_store %arg8[%c0_93, %c0_94], %187 {strides = array<i32>} : memref<2x32xf32, #tpu.memory_space<vmem>>, vector<2x32xf32>,
    %190 = arith.index_cast %c2_i32_80 : i32 to index
    %c0_95 = arith.constant 0 : index
    %c0_96 = arith.constant 0 : index
    %191 = vector.load %arg11[%190, %c0_95, %c0_96] : memref<8x2x32xf32, #tpu.memory_space<vmem>>, vector<1x2x32xf32>
    %192 = vector.shape_cast %191 : vector<1x2x32xf32> to vector<2x32xf32>
    %193 = vector.shape_cast %187 : vector<2x32xf32> to vector<1x2x32xf32>
    tpu.vector_store %arg11[%190, %c0_95, %c0_96], %193 {strides = array<i32>} : memref<8x2x32xf32, #tpu.memory_space<vmem>>, vector<1x2x32xf32>,
    %c3_i32_97 = arith.constant 3 : i32
    %c0_98 = arith.constant 0 : index
    %c0_99 = arith.constant 0 : index
    %194 = vector.load %arg8[%c0_98, %c0_99] : memref<2x32xf32, #tpu.memory_space<vmem>>, vector<2x32xf32>
    %c0_100 = arith.constant 0 : index
    %c0_101 = arith.constant 0 : index
    %195 = vector.load %arg9[%c0_100, %c0_101] : memref<2x32xf32, #tpu.memory_space<vmem>>, vector<2x32xf32>
    %196 = arith.index_cast %c3_i32_97 : i32 to index
    %c0_102 = arith.constant 0 : index
    %c0_103 = arith.constant 0 : index
    %197 = vector.load %arg10[%196, %c0_102, %c0_103] : memref<8x2x128xf32, #tpu.memory_space<vmem>>, vector<1x2x128xf32>
    %198 = vector.shape_cast %197 : vector<1x2x128xf32> to vector<2x128xf32>
    %cst_104 = arith.constant dense<0.000000e+00> : vector<2x128xf32>
    %199 = tpu.matmul %194, %4, %cst_104 {dimension_numbers = #tpu.dot_dimension_numbers<[1], [0], [0], [1], [0, 0, 1, 1], [], []>} : vector<2x32xf32>, vector<32x128xf32>, vector<2x128xf32> -> vector<2x128xf32>
    %200 = arith.addf %198, %199 : vector<2x128xf32>
    %201 = vector.extract_strided_slice %200 {offsets = [0, 0], sizes = [2, 32], strides = [1, 1]} : vector<2x128xf32> to vector<2x32xf32>
    %202 = arith.negf %201 : vector<2x32xf32>
    %203 = math.exp %202 : vector<2x32xf32>
    %cst_105 = arith.constant 1.000000e+00 : f32
    %204 = vector.broadcast %cst_105 : f32 to vector<2x32xf32>
    %205 = arith.addf %204, %203 : vector<2x32xf32>
    %206 = arith.divf %204, %205 : vector<2x32xf32>
    %207 = vector.extract_strided_slice %200 {offsets = [0, 32], sizes = [2, 32], strides = [1, 1]} : vector<2x128xf32> to vector<2x32xf32>
    %208 = arith.negf %207 : vector<2x32xf32>
    %209 = math.exp %208 : vector<2x32xf32>
    %cst_106 = arith.constant 1.000000e+00 : f32
    %210 = vector.broadcast %cst_106 : f32 to vector<2x32xf32>
    %211 = arith.addf %210, %209 : vector<2x32xf32>
    %212 = arith.divf %210, %211 : vector<2x32xf32>
    %213 = vector.extract_strided_slice %200 {offsets = [0, 64], sizes = [2, 32], strides = [1, 1]} : vector<2x128xf32> to vector<2x32xf32>
    %214 = math.tanh %213 : vector<2x32xf32>
    %215 = vector.extract_strided_slice %200 {offsets = [0, 96], sizes = [2, 32], strides = [1, 1]} : vector<2x128xf32> to vector<2x32xf32>
    %216 = arith.negf %215 : vector<2x32xf32>
    %217 = math.exp %216 : vector<2x32xf32>
    %cst_107 = arith.constant 1.000000e+00 : f32
    %218 = vector.broadcast %cst_107 : f32 to vector<2x32xf32>
    %219 = arith.addf %218, %217 : vector<2x32xf32>
    %220 = arith.divf %218, %219 : vector<2x32xf32>
    %221 = arith.mulf %212, %195 : vector<2x32xf32>
    %222 = arith.mulf %206, %214 : vector<2x32xf32>
    %223 = arith.addf %221, %222 : vector<2x32xf32>
    %224 = math.tanh %223 : vector<2x32xf32>
    %225 = arith.mulf %220, %224 : vector<2x32xf32>
    %c0_108 = arith.constant 0 : index
    %c0_109 = arith.constant 0 : index
    %226 = vector.load %arg9[%c0_108, %c0_109] : memref<2x32xf32, #tpu.memory_space<vmem>>, vector<2x32xf32>
    tpu.vector_store %arg9[%c0_108, %c0_109], %223 {strides = array<i32>} : memref<2x32xf32, #tpu.memory_space<vmem>>, vector<2x32xf32>,
    %c0_110 = arith.constant 0 : index
    %c0_111 = arith.constant 0 : index
    %227 = vector.load %arg8[%c0_110, %c0_111] : memref<2x32xf32, #tpu.memory_space<vmem>>, vector<2x32xf32>
    tpu.vector_store %arg8[%c0_110, %c0_111], %225 {strides = array<i32>} : memref<2x32xf32, #tpu.memory_space<vmem>>, vector<2x32xf32>,
    %228 = arith.index_cast %c3_i32_97 : i32 to index
    %c0_112 = arith.constant 0 : index
    %c0_113 = arith.constant 0 : index
    %229 = vector.load %arg11[%228, %c0_112, %c0_113] : memref<8x2x32xf32, #tpu.memory_space<vmem>>, vector<1x2x32xf32>
    %230 = vector.shape_cast %229 : vector<1x2x32xf32> to vector<2x32xf32>
    %231 = vector.shape_cast %225 : vector<2x32xf32> to vector<1x2x32xf32>
    tpu.vector_store %arg11[%228, %c0_112, %c0_113], %231 {strides = array<i32>} : memref<8x2x32xf32, #tpu.memory_space<vmem>>, vector<1x2x32xf32>,
    %c4_i32_114 = arith.constant 4 : i32
    %c0_115 = arith.constant 0 : index
    %c0_116 = arith.constant 0 : index
    %232 = vector.load %arg8[%c0_115, %c0_116] : memref<2x32xf32, #tpu.memory_space<vmem>>, vector<2x32xf32>
    %c0_117 = arith.constant 0 : index
    %c0_118 = arith.constant 0 : index
    %233 = vector.load %arg9[%c0_117, %c0_118] : memref<2x32xf32, #tpu.memory_space<vmem>>, vector<2x32xf32>
    %234 = arith.index_cast %c4_i32_114 : i32 to index
    %c0_119 = arith.constant 0 : index
    %c0_120 = arith.constant 0 : index
    %235 = vector.load %arg10[%234, %c0_119, %c0_120] : memref<8x2x128xf32, #tpu.memory_space<vmem>>, vector<1x2x128xf32>
    %236 = vector.shape_cast %235 : vector<1x2x128xf32> to vector<2x128xf32>
    %cst_121 = arith.constant dense<0.000000e+00> : vector<2x128xf32>
    %237 = tpu.matmul %232, %4, %cst_121 {dimension_numbers = #tpu.dot_dimension_numbers<[1], [0], [0], [1], [0, 0, 1, 1], [], []>} : vector<2x32xf32>, vector<32x128xf32>, vector<2x128xf32> -> vector<2x128xf32>
    %238 = arith.addf %236, %237 : vector<2x128xf32>
    %239 = vector.extract_strided_slice %238 {offsets = [0, 0], sizes = [2, 32], strides = [1, 1]} : vector<2x128xf32> to vector<2x32xf32>
    %240 = arith.negf %239 : vector<2x32xf32>
    %241 = math.exp %240 : vector<2x32xf32>
    %cst_122 = arith.constant 1.000000e+00 : f32
    %242 = vector.broadcast %cst_122 : f32 to vector<2x32xf32>
    %243 = arith.addf %242, %241 : vector<2x32xf32>
    %244 = arith.divf %242, %243 : vector<2x32xf32>
    %245 = vector.extract_strided_slice %238 {offsets = [0, 32], sizes = [2, 32], strides = [1, 1]} : vector<2x128xf32> to vector<2x32xf32>
    %246 = arith.negf %245 : vector<2x32xf32>
    %247 = math.exp %246 : vector<2x32xf32>
    %cst_123 = arith.constant 1.000000e+00 : f32
    %248 = vector.broadcast %cst_123 : f32 to vector<2x32xf32>
    %249 = arith.addf %248, %247 : vector<2x32xf32>
    %250 = arith.divf %248, %249 : vector<2x32xf32>
    %251 = vector.extract_strided_slice %238 {offsets = [0, 64], sizes = [2, 32], strides = [1, 1]} : vector<2x128xf32> to vector<2x32xf32>
    %252 = math.tanh %251 : vector<2x32xf32>
    %253 = vector.extract_strided_slice %238 {offsets = [0, 96], sizes = [2, 32], strides = [1, 1]} : vector<2x128xf32> to vector<2x32xf32>
    %254 = arith.negf %253 : vector<2x32xf32>
    %255 = math.exp %254 : vector<2x32xf32>
    %cst_124 = arith.constant 1.000000e+00 : f32
    %256 = vector.broadcast %cst_124 : f32 to vector<2x32xf32>
    %257 = arith.addf %256, %255 : vector<2x32xf32>
    %258 = arith.divf %256, %257 : vector<2x32xf32>
    %259 = arith.mulf %250, %233 : vector<2x32xf32>
    %260 = arith.mulf %244, %252 : vector<2x32xf32>
    %261 = arith.addf %259, %260 : vector<2x32xf32>
    %262 = math.tanh %261 : vector<2x32xf32>
    %263 = arith.mulf %258, %262 : vector<2x32xf32>
    %c0_125 = arith.constant 0 : index
    %c0_126 = arith.constant 0 : index
    %264 = vector.load %arg9[%c0_125, %c0_126] : memref<2x32xf32, #tpu.memory_space<vmem>>, vector<2x32xf32>
    tpu.vector_store %arg9[%c0_125, %c0_126], %261 {strides = array<i32>} : memref<2x32xf32, #tpu.memory_space<vmem>>, vector<2x32xf32>,
    %c0_127 = arith.constant 0 : index
    %c0_128 = arith.constant 0 : index
    %265 = vector.load %arg8[%c0_127, %c0_128] : memref<2x32xf32, #tpu.memory_space<vmem>>, vector<2x32xf32>
    tpu.vector_store %arg8[%c0_127, %c0_128], %263 {strides = array<i32>} : memref<2x32xf32, #tpu.memory_space<vmem>>, vector<2x32xf32>,
    %266 = arith.index_cast %c4_i32_114 : i32 to index
    %c0_129 = arith.constant 0 : index
    %c0_130 = arith.constant 0 : index
    %267 = vector.load %arg11[%266, %c0_129, %c0_130] : memref<8x2x32xf32, #tpu.memory_space<vmem>>, vector<1x2x32xf32>
    %268 = vector.shape_cast %267 : vector<1x2x32xf32> to vector<2x32xf32>
    %269 = vector.shape_cast %263 : vector<2x32xf32> to vector<1x2x32xf32>
    tpu.vector_store %arg11[%266, %c0_129, %c0_130], %269 {strides = array<i32>} : memref<8x2x32xf32, #tpu.memory_space<vmem>>, vector<1x2x32xf32>,
    %c5_i32_131 = arith.constant 5 : i32
    %c0_132 = arith.constant 0 : index
    %c0_133 = arith.constant 0 : index
    %270 = vector.load %arg8[%c0_132, %c0_133] : memref<2x32xf32, #tpu.memory_space<vmem>>, vector<2x32xf32>
    %c0_134 = arith.constant 0 : index
    %c0_135 = arith.constant 0 : index
    %271 = vector.load %arg9[%c0_134, %c0_135] : memref<2x32xf32, #tpu.memory_space<vmem>>, vector<2x32xf32>
    %272 = arith.index_cast %c5_i32_131 : i32 to index
    %c0_136 = arith.constant 0 : index
    %c0_137 = arith.constant 0 : index
    %273 = vector.load %arg10[%272, %c0_136, %c0_137] : memref<8x2x128xf32, #tpu.memory_space<vmem>>, vector<1x2x128xf32>
    %274 = vector.shape_cast %273 : vector<1x2x128xf32> to vector<2x128xf32>
    %cst_138 = arith.constant dense<0.000000e+00> : vector<2x128xf32>
    %275 = tpu.matmul %270, %4, %cst_138 {dimension_numbers = #tpu.dot_dimension_numbers<[1], [0], [0], [1], [0, 0, 1, 1], [], []>} : vector<2x32xf32>, vector<32x128xf32>, vector<2x128xf32> -> vector<2x128xf32>
    %276 = arith.addf %274, %275 : vector<2x128xf32>
    %277 = vector.extract_strided_slice %276 {offsets = [0, 0], sizes = [2, 32], strides = [1, 1]} : vector<2x128xf32> to vector<2x32xf32>
    %278 = arith.negf %277 : vector<2x32xf32>
    %279 = math.exp %278 : vector<2x32xf32>
    %cst_139 = arith.constant 1.000000e+00 : f32
    %280 = vector.broadcast %cst_139 : f32 to vector<2x32xf32>
    %281 = arith.addf %280, %279 : vector<2x32xf32>
    %282 = arith.divf %280, %281 : vector<2x32xf32>
    %283 = vector.extract_strided_slice %276 {offsets = [0, 32], sizes = [2, 32], strides = [1, 1]} : vector<2x128xf32> to vector<2x32xf32>
    %284 = arith.negf %283 : vector<2x32xf32>
    %285 = math.exp %284 : vector<2x32xf32>
    %cst_140 = arith.constant 1.000000e+00 : f32
    %286 = vector.broadcast %cst_140 : f32 to vector<2x32xf32>
    %287 = arith.addf %286, %285 : vector<2x32xf32>
    %288 = arith.divf %286, %287 : vector<2x32xf32>
    %289 = vector.extract_strided_slice %276 {offsets = [0, 64], sizes = [2, 32], strides = [1, 1]} : vector<2x128xf32> to vector<2x32xf32>
    %290 = math.tanh %289 : vector<2x32xf32>
    %291 = vector.extract_strided_slice %276 {offsets = [0, 96], sizes = [2, 32], strides = [1, 1]} : vector<2x128xf32> to vector<2x32xf32>
    %292 = arith.negf %291 : vector<2x32xf32>
    %293 = math.exp %292 : vector<2x32xf32>
    %cst_141 = arith.constant 1.000000e+00 : f32
    %294 = vector.broadcast %cst_141 : f32 to vector<2x32xf32>
    %295 = arith.addf %294, %293 : vector<2x32xf32>
    %296 = arith.divf %294, %295 : vector<2x32xf32>
    %297 = arith.mulf %288, %271 : vector<2x32xf32>
    %298 = arith.mulf %282, %290 : vector<2x32xf32>
    %299 = arith.addf %297, %298 : vector<2x32xf32>
    %300 = math.tanh %299 : vector<2x32xf32>
    %301 = arith.mulf %296, %300 : vector<2x32xf32>
    %c0_142 = arith.constant 0 : index
    %c0_143 = arith.constant 0 : index
    %302 = vector.load %arg9[%c0_142, %c0_143] : memref<2x32xf32, #tpu.memory_space<vmem>>, vector<2x32xf32>
    tpu.vector_store %arg9[%c0_142, %c0_143], %299 {strides = array<i32>} : memref<2x32xf32, #tpu.memory_space<vmem>>, vector<2x32xf32>,
    %c0_144 = arith.constant 0 : index
    %c0_145 = arith.constant 0 : index
    %303 = vector.load %arg8[%c0_144, %c0_145] : memref<2x32xf32, #tpu.memory_space<vmem>>, vector<2x32xf32>
    tpu.vector_store %arg8[%c0_144, %c0_145], %301 {strides = array<i32>} : memref<2x32xf32, #tpu.memory_space<vmem>>, vector<2x32xf32>,
    %304 = arith.index_cast %c5_i32_131 : i32 to index
    %c0_146 = arith.constant 0 : index
    %c0_147 = arith.constant 0 : index
    %305 = vector.load %arg11[%304, %c0_146, %c0_147] : memref<8x2x32xf32, #tpu.memory_space<vmem>>, vector<1x2x32xf32>
    %306 = vector.shape_cast %305 : vector<1x2x32xf32> to vector<2x32xf32>
    %307 = vector.shape_cast %301 : vector<2x32xf32> to vector<1x2x32xf32>
    tpu.vector_store %arg11[%304, %c0_146, %c0_147], %307 {strides = array<i32>} : memref<8x2x32xf32, #tpu.memory_space<vmem>>, vector<1x2x32xf32>,
    %c6_i32_148 = arith.constant 6 : i32
    %c0_149 = arith.constant 0 : index
    %c0_150 = arith.constant 0 : index
    %308 = vector.load %arg8[%c0_149, %c0_150] : memref<2x32xf32, #tpu.memory_space<vmem>>, vector<2x32xf32>
    %c0_151 = arith.constant 0 : index
    %c0_152 = arith.constant 0 : index
    %309 = vector.load %arg9[%c0_151, %c0_152] : memref<2x32xf32, #tpu.memory_space<vmem>>, vector<2x32xf32>
    %310 = arith.index_cast %c6_i32_148 : i32 to index
    %c0_153 = arith.constant 0 : index
    %c0_154 = arith.constant 0 : index
    %311 = vector.load %arg10[%310, %c0_153, %c0_154] : memref<8x2x128xf32, #tpu.memory_space<vmem>>, vector<1x2x128xf32>
    %312 = vector.shape_cast %311 : vector<1x2x128xf32> to vector<2x128xf32>
    %cst_155 = arith.constant dense<0.000000e+00> : vector<2x128xf32>
    %313 = tpu.matmul %308, %4, %cst_155 {dimension_numbers = #tpu.dot_dimension_numbers<[1], [0], [0], [1], [0, 0, 1, 1], [], []>} : vector<2x32xf32>, vector<32x128xf32>, vector<2x128xf32> -> vector<2x128xf32>
    %314 = arith.addf %312, %313 : vector<2x128xf32>
    %315 = vector.extract_strided_slice %314 {offsets = [0, 0], sizes = [2, 32], strides = [1, 1]} : vector<2x128xf32> to vector<2x32xf32>
    %316 = arith.negf %315 : vector<2x32xf32>
    %317 = math.exp %316 : vector<2x32xf32>
    %cst_156 = arith.constant 1.000000e+00 : f32
    %318 = vector.broadcast %cst_156 : f32 to vector<2x32xf32>
    %319 = arith.addf %318, %317 : vector<2x32xf32>
    %320 = arith.divf %318, %319 : vector<2x32xf32>
    %321 = vector.extract_strided_slice %314 {offsets = [0, 32], sizes = [2, 32], strides = [1, 1]} : vector<2x128xf32> to vector<2x32xf32>
    %322 = arith.negf %321 : vector<2x32xf32>
    %323 = math.exp %322 : vector<2x32xf32>
    %cst_157 = arith.constant 1.000000e+00 : f32
    %324 = vector.broadcast %cst_157 : f32 to vector<2x32xf32>
    %325 = arith.addf %324, %323 : vector<2x32xf32>
    %326 = arith.divf %324, %325 : vector<2x32xf32>
    %327 = vector.extract_strided_slice %314 {offsets = [0, 64], sizes = [2, 32], strides = [1, 1]} : vector<2x128xf32> to vector<2x32xf32>
    %328 = math.tanh %327 : vector<2x32xf32>
    %329 = vector.extract_strided_slice %314 {offsets = [0, 96], sizes = [2, 32], strides = [1, 1]} : vector<2x128xf32> to vector<2x32xf32>
    %330 = arith.negf %329 : vector<2x32xf32>
    %331 = math.exp %330 : vector<2x32xf32>
    %cst_158 = arith.constant 1.000000e+00 : f32
    %332 = vector.broadcast %cst_158 : f32 to vector<2x32xf32>
    %333 = arith.addf %332, %331 : vector<2x32xf32>
    %334 = arith.divf %332, %333 : vector<2x32xf32>
    %335 = arith.mulf %326, %309 : vector<2x32xf32>
    %336 = arith.mulf %320, %328 : vector<2x32xf32>
    %337 = arith.addf %335, %336 : vector<2x32xf32>
    %338 = math.tanh %337 : vector<2x32xf32>
    %339 = arith.mulf %334, %338 : vector<2x32xf32>
    %c0_159 = arith.constant 0 : index
    %c0_160 = arith.constant 0 : index
    %340 = vector.load %arg9[%c0_159, %c0_160] : memref<2x32xf32, #tpu.memory_space<vmem>>, vector<2x32xf32>
    tpu.vector_store %arg9[%c0_159, %c0_160], %337 {strides = array<i32>} : memref<2x32xf32, #tpu.memory_space<vmem>>, vector<2x32xf32>,
    %c0_161 = arith.constant 0 : index
    %c0_162 = arith.constant 0 : index
    %341 = vector.load %arg8[%c0_161, %c0_162] : memref<2x32xf32, #tpu.memory_space<vmem>>, vector<2x32xf32>
    tpu.vector_store %arg8[%c0_161, %c0_162], %339 {strides = array<i32>} : memref<2x32xf32, #tpu.memory_space<vmem>>, vector<2x32xf32>,
    %342 = arith.index_cast %c6_i32_148 : i32 to index
    %c0_163 = arith.constant 0 : index
    %c0_164 = arith.constant 0 : index
    %343 = vector.load %arg11[%342, %c0_163, %c0_164] : memref<8x2x32xf32, #tpu.memory_space<vmem>>, vector<1x2x32xf32>
    %344 = vector.shape_cast %343 : vector<1x2x32xf32> to vector<2x32xf32>
    %345 = vector.shape_cast %339 : vector<2x32xf32> to vector<1x2x32xf32>
    tpu.vector_store %arg11[%342, %c0_163, %c0_164], %345 {strides = array<i32>} : memref<8x2x32xf32, #tpu.memory_space<vmem>>, vector<1x2x32xf32>,
    %c7_i32_165 = arith.constant 7 : i32
    %c0_166 = arith.constant 0 : index
    %c0_167 = arith.constant 0 : index
    %346 = vector.load %arg8[%c0_166, %c0_167] : memref<2x32xf32, #tpu.memory_space<vmem>>, vector<2x32xf32>
    %c0_168 = arith.constant 0 : index
    %c0_169 = arith.constant 0 : index
    %347 = vector.load %arg9[%c0_168, %c0_169] : memref<2x32xf32, #tpu.memory_space<vmem>>, vector<2x32xf32>
    %348 = arith.index_cast %c7_i32_165 : i32 to index
    %c0_170 = arith.constant 0 : index
    %c0_171 = arith.constant 0 : index
    %349 = vector.load %arg10[%348, %c0_170, %c0_171] : memref<8x2x128xf32, #tpu.memory_space<vmem>>, vector<1x2x128xf32>
    %350 = vector.shape_cast %349 : vector<1x2x128xf32> to vector<2x128xf32>
    %cst_172 = arith.constant dense<0.000000e+00> : vector<2x128xf32>
    %351 = tpu.matmul %346, %4, %cst_172 {dimension_numbers = #tpu.dot_dimension_numbers<[1], [0], [0], [1], [0, 0, 1, 1], [], []>} : vector<2x32xf32>, vector<32x128xf32>, vector<2x128xf32> -> vector<2x128xf32>
    %352 = arith.addf %350, %351 : vector<2x128xf32>
    %353 = vector.extract_strided_slice %352 {offsets = [0, 0], sizes = [2, 32], strides = [1, 1]} : vector<2x128xf32> to vector<2x32xf32>
    %354 = arith.negf %353 : vector<2x32xf32>
    %355 = math.exp %354 : vector<2x32xf32>
    %cst_173 = arith.constant 1.000000e+00 : f32
    %356 = vector.broadcast %cst_173 : f32 to vector<2x32xf32>
    %357 = arith.addf %356, %355 : vector<2x32xf32>
    %358 = arith.divf %356, %357 : vector<2x32xf32>
    %359 = vector.extract_strided_slice %352 {offsets = [0, 32], sizes = [2, 32], strides = [1, 1]} : vector<2x128xf32> to vector<2x32xf32>
    %360 = arith.negf %359 : vector<2x32xf32>
    %361 = math.exp %360 : vector<2x32xf32>
    %cst_174 = arith.constant 1.000000e+00 : f32
    %362 = vector.broadcast %cst_174 : f32 to vector<2x32xf32>
    %363 = arith.addf %362, %361 : vector<2x32xf32>
    %364 = arith.divf %362, %363 : vector<2x32xf32>
    %365 = vector.extract_strided_slice %352 {offsets = [0, 64], sizes = [2, 32], strides = [1, 1]} : vector<2x128xf32> to vector<2x32xf32>
    %366 = math.tanh %365 : vector<2x32xf32>
    %367 = vector.extract_strided_slice %352 {offsets = [0, 96], sizes = [2, 32], strides = [1, 1]} : vector<2x128xf32> to vector<2x32xf32>
    %368 = arith.negf %367 : vector<2x32xf32>
    %369 = math.exp %368 : vector<2x32xf32>
    %cst_175 = arith.constant 1.000000e+00 : f32
    %370 = vector.broadcast %cst_175 : f32 to vector<2x32xf32>
    %371 = arith.addf %370, %369 : vector<2x32xf32>
    %372 = arith.divf %370, %371 : vector<2x32xf32>
    %373 = arith.mulf %364, %347 : vector<2x32xf32>
    %374 = arith.mulf %358, %366 : vector<2x32xf32>
    %375 = arith.addf %373, %374 : vector<2x32xf32>
    %376 = math.tanh %375 : vector<2x32xf32>
    %377 = arith.mulf %372, %376 : vector<2x32xf32>
    %c0_176 = arith.constant 0 : index
    %c0_177 = arith.constant 0 : index
    %378 = vector.load %arg9[%c0_176, %c0_177] : memref<2x32xf32, #tpu.memory_space<vmem>>, vector<2x32xf32>
    tpu.vector_store %arg9[%c0_176, %c0_177], %375 {strides = array<i32>} : memref<2x32xf32, #tpu.memory_space<vmem>>, vector<2x32xf32>,
    %c0_178 = arith.constant 0 : index
    %c0_179 = arith.constant 0 : index
    %379 = vector.load %arg8[%c0_178, %c0_179] : memref<2x32xf32, #tpu.memory_space<vmem>>, vector<2x32xf32>
    tpu.vector_store %arg8[%c0_178, %c0_179], %377 {strides = array<i32>} : memref<2x32xf32, #tpu.memory_space<vmem>>, vector<2x32xf32>,
    %380 = arith.index_cast %c7_i32_165 : i32 to index
    %c0_180 = arith.constant 0 : index
    %c0_181 = arith.constant 0 : index
    %381 = vector.load %arg11[%380, %c0_180, %c0_181] : memref<8x2x32xf32, #tpu.memory_space<vmem>>, vector<1x2x32xf32>
    %382 = vector.shape_cast %381 : vector<1x2x32xf32> to vector<2x32xf32>
    %383 = vector.shape_cast %377 : vector<2x32xf32> to vector<1x2x32xf32>
    tpu.vector_store %arg11[%380, %c0_180, %c0_181], %383 {strides = array<i32>} : memref<8x2x32xf32, #tpu.memory_space<vmem>>, vector<1x2x32xf32>,
    %c8_i32_182 = arith.constant 8 : i32
    %c0_183 = arith.constant 0 : index
    %c0_184 = arith.constant 0 : index
    %c0_185 = arith.constant 0 : index
    %384 = vector.load %arg5[%c0_183, %c0_184, %c0_185] : memref<8x2x32xf32, #tpu.memory_space<vmem>>, vector<8x2x32xf32>
    %c0_186 = arith.constant 0 : index
    %c0_187 = arith.constant 0 : index
    %c0_188 = arith.constant 0 : index
    %385 = vector.load %arg11[%c0_186, %c0_187, %c0_188] : memref<8x2x32xf32, #tpu.memory_space<vmem>>, vector<8x2x32xf32>
    %386 = arith.mulf %385, %384 : vector<8x2x32xf32>
    %cst_189 = arith.constant dense<0.000000e+00> : vector<8x2xf32>
    %387 = vector.multi_reduction <add>, %386, %cst_189 [2] : vector<8x2x32xf32> to vector<8x2xf32>
    %c0_190 = arith.constant 0 : index
    %c0_191 = arith.constant 0 : index
    %388 = vector.load %arg6[%c0_190, %c0_191] : memref<8x2xf32, #tpu.memory_space<vmem>>, vector<8x2xf32>
    %389 = arith.addf %387, %388 : vector<8x2xf32>
    %390 = arith.negf %389 : vector<8x2xf32>
    %391 = math.exp %390 : vector<8x2xf32>
    %cst_192 = arith.constant 1.000000e+00 : f32
    %392 = vector.broadcast %cst_192 : f32 to vector<8x2xf32>
    %393 = arith.addf %392, %391 : vector<8x2xf32>
    %394 = arith.divf %392, %393 : vector<8x2xf32>
    %c0_193 = arith.constant 0 : index
    %c0_194 = arith.constant 0 : index
    %395 = vector.load %arg7[%c0_193, %c0_194] : memref<8x2xf32, #tpu.memory_space<vmem>>, vector<8x2xf32>
    tpu.vector_store %arg7[%c0_193, %c0_194], %394 {strides = array<i32>} : memref<8x2xf32, #tpu.memory_space<vmem>>, vector<8x2xf32>,
    return
  }
  func.func @transform_0(%arg0: i32) -> (i32, i32, i32) {
    %c0_i32 = arith.constant 0 : i32
    %c0_i32_0 = arith.constant 0 : i32
    %c0_i32_1 = arith.constant 0 : i32
    return %arg0, %c0_i32, %c0_i32_0 : i32, i32, i32
  }
  func.func @transform_1(%arg0: i32) -> (i32, i32) {
    %c0_i32 = arith.constant 0 : i32
    %c0_i32_0 = arith.constant 0 : i32
    %c0_i32_1 = arith.constant 0 : i32
    return %c0_i32, %c0_i32_0 : i32, i32
  }
  func.func @transform_2(%arg0: i32) -> (i32, i32) {
    %c0_i32 = arith.constant 0 : i32
    %c0_i32_0 = arith.constant 0 : i32
    %c0_i32_1 = arith.constant 0 : i32
    return %c0_i32, %c0_i32_0 : i32, i32
  }
  func.func @transform_3(%arg0: i32) -> (i32, i32) {
    %c0_i32 = arith.constant 0 : i32
    %c0_i32_0 = arith.constant 0 : i32
    %c0_i32_1 = arith.constant 0 : i32
    return %c0_i32, %c0_i32_0 : i32, i32
  }
  func.func @transform_4(%arg0: i32) -> (i32, i32, i32) {
    %c0_i32 = arith.constant 0 : i32
    %c0_i32_0 = arith.constant 0 : i32
    %c0_i32_1 = arith.constant 0 : i32
    return %arg0, %c0_i32, %c0_i32_0 : i32, i32, i32
  }
  func.func @transform_5(%arg0: i32) -> (i32, i32) {
    %c0_i32 = arith.constant 0 : i32
    %c0_i32_0 = arith.constant 0 : i32
    return %arg0, %c0_i32 : i32, i32
  }
  func.func @transform_6(%arg0: i32) -> (i32, i32) {
    %c0_i32 = arith.constant 0 : i32
    %c0_i32_0 = arith.constant 0 : i32
    return %arg0, %c0_i32 : i32, i32
  }
}

</mosaic_0001>

<bundles_post_ra>
// kernel: tpu_custom_call.1
= control target key start
LH: loop header
LB: loop body
LE: loop exit
PB: predicated region body
PF: predicated region fallthrough
CT: control target
= control target key end

     0   :  { %s2483_s0 = inlined_call_operand.hbm [shape: f32[16,2,32], index: 0, kind: input, shape index: {}]   ;;  %s2484_s1 = inlined_call_operand.hbm [shape: f32[32,128], index: 1, kind: input, shape index: {}]   ;;  %s2485_s2 = inlined_call_operand.hbm [shape: f32[32,128], index: 2, kind: input, shape index: {}]   ;;  %s2486_s3 = inlined_call_operand.vmem [shape: f32[1,128], index: 3, kind: input, shape index: {}]   ;;  %s2487_s4 = inlined_call_operand.hbm [shape: f32[16,2,32], index: 4, kind: input, shape index: {}]   ;;  %s2488_s5 = inlined_call_operand.vmem [shape: f32[16,2], index: 5, kind: input, shape index: {}]   ;;  %s2489_s6 = inlined_call_operand.vmem [shape: f32[16,2], index: 6, kind: output, shape index: {}]  }
   0x1   :  { %2491 = sst [smem:[#allocation16_spill]] %s2483_s0 }
   0x2   :  { %2492 = sst [smem:[#allocation17_spill]] %s2484_s1 }
   0x3   :  { %11 = vsyncpa [#allocation7], 0 }
   0x4   :  { %13 = vsyncpa [#allocation7 + $0x1], 0 }
   0x5   :  { %14 = vsyncpa [#allocation9], 0 }
   0x6   :  { %15 = vsyncpa [#allocation12], 0 }
   0x7   :  { %17 = vsyncpa [#allocation12 + $0x1], 0  ;;  %s2141_s21 = smov 0   ;;  %s2143_s22 = smov 0  }
   0x8   :  { %s2145_s23 = smov 0   ;;  %s2147_s24 = smov 0  }
   0x9 LB: > { %s2160_s25 = sadd.s32 4294967295, %s2093_s24   ;;  %p43_p0 = scmp.ne.s32.totalorder %s2085_s22, %s2081_s21  ;;  %s2093_s24 = sphi %s2147_s24, %s2502_s24   ;;  %s2089_s23 = sphi %s2145_s23, %s2501_s23   ;;  %s2085_s22 = sphi %s2143_s22, %s2500_s22   ;;  %s2081_s21 = sphi %s2141_s21, %s2499_s21  }
   0xa   : > { %p44_p1 = scmp.eq.s32.totalorder %s2160_s25, 0  ;;  %p1693_p2 = scmp.ge.s32.totalorder %s2093_s24, 1 }
   0xb   : > { %p195_p3 = scmp.lt.s32.totalorder %s2093_s24, 3  ;;  %p1694_p4 = scmp.ne.s32.totalorder %s2160_s25, 0 }
   0xc   : > { %p2169_p5 = por %p44_p1, %p43_p0  ;;  %s2494_s1 = sld [smem:[#allocation17_spill]] }
   0xd   : > { %p2176_p6 = pnand %p1693_p2, %p195_p3  ;;  %s2095_s7 = smov [#allocation8]  }
   0xe   : > { %s208_s8 = sshll.u32 %s2095_s7, 4  ;;  %s220_s11 = sshll.u32 %s2485_s2, 4  ;;  %s209_s8 = int_to_ptr.vmem [resolvable:$true] %s208_s8  ;;  %s221_s11 = int_to_ptr.hbm [resolvable:$true] %s220_s11 }
   0xf   : > { %p1766_p7 = pneg %p2176_p6  ;;  %s2096_s12 = smov 128  }
  0x10   : > { %s2097_s13 = smov 8   ;;  %s2098_s14 = smov [#allocation10]  }
  0x11   : > { %p1767_p8 = pnand %p1766_p7, %p44_p1  ;;  %s222_s15 = sshll.u32 %s2098_s14, 4  ;;  %s223_s15 = int_to_ptr.vmem [resolvable:$true] %s222_s15 }
  0x12   : > { %s206_s29 = sshll.u32 %s2494_s1, 4  ;;  %s2188_s16 = sadd.s32 1, %s2093_s24   ;;  %s207_s29 = int_to_ptr.hbm [resolvable:$true] %s206_s29 }
  0x13   : > { %1769 = dma.hbm_to_vmem [thread:$0]  (!%p1767_p8), %s207_s29, 512, %s209_s8, [#allocation9], %s2096_s12, %s2096_s12, %s2097_s13  }
  0x14   : > { %1772 = dma.hbm_to_vmem [thread:$0]  (!%p1767_p8), %s221_s11, 512, %s223_s15, [#allocation9], %s2096_s12, %s2096_s12, %s2097_s13  }
  0x15   : > { %s30_s17 = sadd.s32 1, %s2089_s23  ;;  %s27_s18 = ssub.s32 %s2093_s24, %s2188_s16 }
  0x16   : > { %p37_p9 = scmp.ne.s32.totalorder %s2089_s23, %s2085_s22  ;;  %p28_p10 = scmp.eq.s32.totalorder %s27_s18, 0 }
  0x17   : > { %p38_p11 = scmp.eq.s32.totalorder %s2093_s24, 0  ;;  %p1782_p12 = scmp.lt.s32.totalorder %s2093_s24, 2 }
  0x18   : > { %s2198_s19 = sand.u32 1, %s2089_s23   ;;  %s1752_s27 = sshll.u32 %s2093_s24, 4 }
  0x19   : > { %s2201_s20 = scalar_select %p28_p10, %s2089_s23, %s30_s17  }
  0x1a   : > { %p39_p13 = por %p38_p11, %p37_p9  ;;  %s2490_s21 = sshll.u32 %s2198_s19, 4 }
  0x1b   : > { %s2496_s0 = sld [smem:[#allocation16_spill]]  ;;  %s243_s9 = scalar_lea.vmem [#allocation6], %s2490_s21 }
  0x1c   : > { %s251_s10 = sshll.u32 %s243_s9, 4  ;;  %p2212_p0 = pnand %p1782_p12, %p39_p13  ;;  %s252_s10 = int_to_ptr.vmem [resolvable:$true] %s251_s10 }
  0x1d   : > { %s240_s12 = scalar_lea.sflag [#allocation7], %s2198_s19 }
  0x1e   : > { %p1995_p3 = pneg %p2212_p0 }
  0x21   : > { %s248_s7 = scalar_lea.hbm %s2496_s0, %s1752_s27  ;;  %s1998_s18 = scalar_lea.hbm %s2496_s0, 32 }
  0x22   : > { %s249_s8 = sshll.u32 %s248_s7, 4  ;;  %s250_s8 = int_to_ptr.hbm [resolvable:$true] %s249_s8 }
  0x23   : > { %s1991_s13 = sshra.s32 %s250_s8, 4  ;;  %s1992_s13 = int_to_ptr.hbm [resolvable:$true] %s1991_s13 }
  0x24   : > { %s1993_s14 = scalar_lea.hbm %s1992_s13, 16  ;;  %p1999_p9 = scmp.lt.s32.totalorder %s1992_s13, %s2496_s0 }
  0x25   : > { %p1994_p2 = scmp.ne.s32.totalorder %s1992_s13, %s1993_s14  ;;  %p2000_p10 = scmp.lt.s32.totalorder %s1998_s18, %s1993_s14 }
  0x27   : > { %p1996_p7 = pnand %p1995_p3, %p1994_p2  ;;  %p2001_p11 = por %p2000_p10, %p1999_p9 }
  0x29   : > { %p1997_p8 = pneg %p1996_p7 }
  0x2b   : > { %p2002_p12 = pnand %p2001_p11, %p1997_p8 }
  0x2d   : > { %2005 = shalt.err (!%p2002_p12)
}
  0x2e   : > { %s2099_s7 = smov 32   ;;  %s2100_s9 = smov 2  }
  0x2f   : > { %1776 = dma.hbm_to_vmem [thread:$0]  (!%p2212_p0), %s250_s8, 256, %s252_s10, %s240_s12, %s2099_s7, %s2099_s7, %s2100_s9  }
  0x30   : > { %s270_s21 = scalar_lea.hbm %s2487_s4, %s1752_s27  ;;  %s2498_s28 = sshll.u32 %s2198_s19, 4 }
  0x31   : > { %s265_s13 = scalar_lea.vmem [#allocation11], %s2498_s28  ;;  %s271_s18 = sshll.u32 %s270_s21, 4  ;;  %s272_s18 = int_to_ptr.hbm [resolvable:$true] %s271_s18 }
  0x32   : > { %s273_s14 = sshll.u32 %s265_s13, 4  ;;  %s262_s29 = scalar_lea.sflag [#allocation12], %s2198_s19  ;;  %s274_s14 = int_to_ptr.vmem [resolvable:$true] %s273_s14 }
  0x33   : > { %s2021_s0 = sshra.s32 %s272_s18, 4  ;;  %s2028_s10 = scalar_lea.hbm %s2487_s4, 32  ;;  %s2022_s0 = int_to_ptr.hbm [resolvable:$true] %s2021_s0 }
  0x34   : > { %s2023_s1 = scalar_lea.hbm %s2022_s0, 16  ;;  %p2029_p8 = scmp.lt.s32.totalorder %s2022_s0, %s2487_s4 }
  0x35   : > { %p2024_p13 = scmp.ne.s32.totalorder %s2022_s0, %s2023_s1  ;;  %p2030_p9 = scmp.lt.s32.totalorder %s2028_s10, %s2023_s1 }
  0x37   : > { %p2026_p2 = pnand %p2024_p13, %p1995_p3  ;;  %p2031_p10 = por %p2030_p9, %p2029_p8 }
  0x39   : > { %p2027_p7 = pneg %p2026_p2 }
  0x3b   : > { %p2032_p11 = pnand %p2031_p10, %p2027_p7 }
  0x3d   : > { %2035 = shalt.err (!%p2032_p11)
}
  0x3e   : > { %1779 = dma.hbm_to_vmem [thread:$0]  (!%p2212_p0), %s272_s18, 256, %s274_s14, %s262_s29, %s2099_s7, %s2099_s7, %s2100_s9  }
  0x3f   : > { %292 = sbr.rel (%p2176_p6) target bundleno = 5135 (0x140f), region = 44  ;;  %s294_s19 = sand.u32 (!%p2176_p6), 1, %s2085_s22  }
  0x40   : > { %s1704_s21 = sshll.u32 (!%p2176_p6), %s294_s19, 4  ;;  %s295_s15 = scalar_lea.sflag (!%p2176_p6), [#allocation7], %s294_s19 }
  0x41   : > { %s2252_s17 = scalar_lea.vmem (!%p2176_p6), [#allocation6], %s1704_s21 }
  0x44   : > { %2068 = dma.done.wait (%p2169_p5), %s295_s15, 256  }
  0x45   : > { %2070 = vsyncadd (%p2169_p5), %s295_s15, 4294967040 }
  0x46   : > { %2072 = dma.done.wait (%p44_p1), [#allocation9], 1024  }
  0x47   : > { %2074 = vsyncadd (%p44_p1), [#allocation9], 4294966272  ;;  %s315_s0 = scalar_lea.sflag [#allocation12], %s294_s19  ;;  %s2262_s1 = scalar_lea.vmem [#allocation11], %s1704_s21 }
  0x48   : > { %2076 = dma.done.wait (%p2169_p5), %s315_s0, 256  }
  0x49   : > { %2078 = vsyncadd (%p2169_p5), %s315_s0, 4294967040  ;;  %p358_p6 = scmp.lt.s32.totalorder %s2160_s25, 1 }
  0x4a   : > { %369 = sbr.rel (%p1694_p4) target bundleno = 82 (0x52), region = 64 }
  0x4b   : > { %s359_s30 = scalar_select %p358_p6, %s2160_s25, 1 }
  0x4d   : > { %s1708_s11 = sshll.u32 %s359_s30, 3 }
  0x4e   : > { %s2273_s28 = scalar_lea.vmem %s2488_s5, %s1708_s11  ;;  %s2278_s18 = scalar_lea.vmem %s2489_s6, %s1708_s11 }
  0x4f   : > { %vm370_vm0 = vcmask 254976   ;;  %v2101_v0 = vmov 0.0  }
  0x50   : > { %371 = vst.msk [vmem:[#allocation2] sm:$0x3] %vm370_vm0, %v2101_v0 }
  0x51   : > { %372 = vst.msk [vmem:[#allocation3] sm:$0x3] %vm370_vm0, %v2101_v0 }
  0x52 PF: > { %v376_v1 = vld [vmem:[#allocation8 + $0x18] sm:$0xff]  ;;  %v375_v2 = vld [vmem:[#allocation8 + $0x10] sm:$0xff]  ;;  %v374_v3 = vld [vmem:[#allocation8 + $0x8] sm:$0xff]  ;;  %vm386_vm1 = vcmask 261120   ;;  %s2102_s29 = smov 64   ;;  %s2103_s24 = smov 32  }
  0x53   : > { %402 = vmatpush.msra.mxu0 %v376_v1  ;;  %428 = vmatpush.msra.mxu1 %v376_v1  ;;  %v373_v4 = vld [vmem:[#allocation8] sm:$0xff]  ;;  %v1718_v6 = vld [vmem:[%s2252_s17 + $0x8] sm:$0x3]  ;;  %v2288_v8 = vld [vmem:[#allocation10 + $0x10] sm:$0xff]  ;;  %s2104_s8 = smov 96   ;;  %vm672_vm6 = vcmask 254976  }
  0x54   : > { %455 = vmatpush.msra.mxu2 %v376_v1  ;;  %482 = vmatpush.msra.mxu3 %v376_v1  ;;  %v385_v5 = vld [vmem:[%s2252_s17] sm:$0x3]  ;;  %v2285_v7 = vld [vmem:[#allocation10 + $0x18] sm:$0xff]  ;;  %v2291_v9 = vld [vmem:[#allocation10 + $0x8] sm:$0xff] }
  0x55   : > { %403 = vmatpush.msra.mxu0 %v375_v2  ;;  %429 = vmatpush.msra.mxu1 %v375_v2  ;;  %v2294_v10 = vld [vmem:[#allocation10] sm:$0xff]  ;;  %v2306_v12 = vld [vmem:[%s2486_s3] ss:$0 sm:$0xff]  ;;  %v1720_v45 = vld [vmem:[%s2252_s17 + $0xa] sm:$0x3] }
  0x56   : > { %456 = vmatpush.msra.mxu2 %v375_v2  ;;  %483 = vmatpush.msra.mxu3 %v375_v2  ;;  %v1712_v42 = vld [vmem:[%s2252_s17 + $0x2] sm:$0x3] }
  0x57   : > { %404 = vmatpush.msra.mxu0 %v374_v3  ;;  %430 = vmatpush.msra.mxu1 %v374_v3  ;;  %v600_v11 = vld [vmem:[#allocation2] sm:$0x3] }
  0x58   : > { %457 = vmatpush.msra.mxu2 %v374_v3  ;;  %484 = vmatpush.msra.mxu3 %v374_v3  ;;  %v601_v21 = vld [vmem:[#allocation3] sm:$0x3] }
  0x59   : > { %405 = vmatpush.msra.mxu0 %v373_v4  ;;  %431 = vmatpush.msra.mxu1 %v373_v4 }
  0x5a   : > { %1711 = vmatmul.msk.f32.vlgmr.msra.gmra.mxu0 %vm386_vm1, %v385_v5  ;;  %458 = vmatpush.msra.mxu2 %v373_v4 }
  0x5b   : > { %536 = vmatpush.msrb.mxu1 %v376_v1  ;;  %509 = vmatpush.msrb.mxu0 %v376_v1 }
  0x5c   : > { %563 = vmatpush.msrb.mxu2 %v376_v1  ;;  %485 = vmatpush.msra.mxu3 %v373_v4 }
  0x5d   : > { %537 = vmatpush.msrb.mxu1 %v375_v2  ;;  %510 = vmatpush.msrb.mxu0 %v375_v2 }
  0x5e   : > { %564 = vmatpush.msrb.mxu2 %v375_v2  ;;  %590 = vmatpush.msrb.mxu3 %v376_v1 }
  0x5f   : > { %538 = vmatpush.msrb.mxu1 %v374_v3  ;;  %511 = vmatpush.msrb.mxu0 %v374_v3 }
  0x60   : > { %565 = vmatpush.msrb.mxu2 %v374_v3  ;;  %591 = vmatpush.msrb.mxu3 %v375_v2 }
  0x61   : > { %539 = vmatpush.msrb.mxu1 %v373_v4  ;;  %512 = vmatpush.msrb.mxu0 %v373_v4 }
  0x62   : > { %1719 = vmatmul.msk.f32.vlgmr.msrb.gmra.mxu0 %vm386_vm1, %v1718_v6  ;;  %566 = vmatpush.msrb.mxu2 %v373_v4 }
  0x63   : > { %618 = vmatpush.msra.mxu0 %v2285_v7  ;;  %592 = vmatpush.msrb.mxu3 %v374_v3 }
  0x64   : > { %1713 = vmatmul.msk.f32.vlgmr.msra.gmra.mxu1 %vm386_vm1, %v1712_v42 }
  0x65   : > { %619 = vmatpush.msra.mxu0 %v2288_v8  ;;  %593 = vmatpush.msrb.mxu3 %v373_v4 }
  0x66   : > { %698 = vmatpush.msra.mxu1 %v2285_v7 }
  0x67   : > { %620 = vmatpush.msra.mxu0 %v2291_v9 }
  0x68   : > { %699 = vmatpush.msra.mxu1 %v2288_v8 }
  0x69   : > { %621 = vmatpush.msra.mxu0 %v2294_v10 }
  0x6a   : > { %1726 = vmatmul.msk.f32.vlgmr.msra.gmra.mxu0 %vm386_vm1, %v600_v11  ;;  %700 = vmatpush.msra.mxu1 %v2291_v9 }
  0x6b   : > { %938 = vmatpush.msrb.mxu0 %v2285_v7 }
  0x6c   : > { %701 = vmatpush.msra.mxu1 %v2294_v10 }
  0x6d   : > { %939 = vmatpush.msrb.mxu0 %v2288_v8  ;;  %1721 = vmatmul.msk.f32.vlgmr.msrb.gmra.mxu1 %vm386_vm1, %v1720_v45 }
  0x6e   : > { %1018 = vmatpush.msrb.mxu1 %v2285_v7 }
  0x6f   : > { %940 = vmatpush.msrb.mxu0 %v2291_v9 }
  0x70   : > { %1019 = vmatpush.msrb.mxu1 %v2288_v8 }
  0x71   : > { %941 = vmatpush.msrb.mxu0 %v2294_v10 }
  0x72   : > { %1020 = vmatpush.msrb.mxu1 %v2291_v9 }
  0x74   : > { %1021 = vmatpush.msrb.mxu1 %v2294_v10 }
  0xd7   : > { %v407_v13 = vpop.f32.mrf.mxu0 }
  0xd8   : > { %v408_v14 = vadd.f32 %v2306_v12, %v407_v13 }
  0xda   : > { %410 = vst [vmem:[#allocation4] sm:$0x3] %v408_v14 }
  0xdf   : > { %v514_v15 = vpop.f32.mrf.mxu0 }
  0xe0   : > { %v515_v16 = vadd.f32 %v2306_v12, %v514_v15 }
  0xe1   : > { %v602_v17 = vld [vmem:[#allocation4] sm:$0x3]  ;;  %v433_v49 = vpop.f32.mrf.mxu1 }
  0xe2   : > { %518 = vst [vmem:[#allocation4 + $0x8] sm:$0x3] %v515_v16  ;;  %v434_v50 = vadd.f32 %v2306_v12, %v433_v49 }
  0xe4   : > { %437 = vst [vmem:[#allocation4 + $0x2] sm:$0x3] %v434_v50 }
  0xe7   : > { %v623_v18 = vpop.f32.mrf.mxu0 }
  0xe8   : > { %v626_v19 = vadd.f32 %v623_v18, %v602_v17 }
  0xea   : > { %1835 = vtanh.f32 %v626_v19  ;;  %v1727_v22 = vmul.f32 -1.442695, %v626_v19  ;;  %v541_v52 = vpop.f32.mrf.mxu1 }
  0xeb   : > { %v542_v53 = vadd.f32 %v2306_v12, %v541_v52  ;;  %v682_v54 = vld [vmem:[#allocation4 + $0x2] sm:$0x3] }
  0xec   : > { %1837 = vpow2.f32 %v1727_v22 }
  0xed   : > { %545 = vst [vmem:[#allocation4 + $0xa] sm:$0x3] %v542_v53 }
  0xf0   : > { %v1836_v20 = vpop.eup %1835 }
  0xf1   : > { %653 = vrot.lane.b32.xlu0 %v1836_v20, %s2102_s29  ;;  %v1714_v20 = vld [vmem:[%s2252_s17 + $0x4] sm:$0x3] }
  0xf2   : > { %v1838_v23 = vpop.eup %1837  ;;  %1715 = vmatmul.msk.f32.vlgmr.msra.gmra.mxu2 %vm386_vm1, %v1714_v20 }
  0xf3   : > { %v630_v24 = vadd.f32 1.0, %v1838_v23  ;;  %778 = vmatpush.msra.mxu2 %v2285_v7 }
  0xf5   : > { %1839 = vrcp.f32 %v630_v24  ;;  %v642_v30 = vand.u32 2147483648, %v630_v24  ;;  %vm636_vm3 = vweird.f32 %v630_v24  ;;  %v640_v31 = vand.u32 2147483647, %v630_v24  ;;  %779 = vmatpush.msra.mxu2 %v2288_v8 }
  0xf7   : > { %v643_v33 = vor.u32 1.1754944e-38, %v642_v30  ;;  %vm641_vm5 = vcmp.eq.f32.partialorder %v640_v31, 8.507059e+37  ;;  %780 = vmatpush.msra.mxu2 %v2291_v9 }
  0xf9   : > { %648 = vrot.lane.b32.xlu0 %v601_v21, %s2103_s24  ;;  %781 = vmatpush.msra.mxu2 %v2294_v10 }
  0xfb   : > { %v1840_v25 = vpop.eup %1839 }
  0xfc   : > { %v632_v26 = vmul.f32 %v1840_v25, %v630_v24  ;;  %vm637_vm2 = vweird.f32 %v1840_v25  ;;  %v1722_v24 = vld [vmem:[%s2252_s17 + $0xc] sm:$0x3] }
  0xfd   : > { %vm638_vm4 = vmor %vm636_vm3, %vm637_vm2  ;;  %1723 = vmatmul.msk.f32.vlgmr.msrb.gmra.mxu2 %vm386_vm1, %v1722_v24 }
  0xfe   : > { %v633_v27 = vsub.f32 1.0, %v632_v26  ;;  %1098 = vmatpush.msrb.mxu2 %v2285_v7 }
 0x100   : > { %v634_v28 = vmul.f32 %v1840_v25, %v633_v27  ;;  %1099 = vmatpush.msrb.mxu2 %v2288_v8 }
 0x102   : > { %v635_v29 = vadd.f32 %v1840_v25, %v634_v28  ;;  %1100 = vmatpush.msrb.mxu2 %v2291_v9 }
 0x104   : > { %v639_v32 = vsel %vm638_vm4, %v1840_v25, %v635_v29  ;;  %1101 = vmatpush.msrb.mxu2 %v2294_v10 }
 0x105   : > { %v644_v35 = vsel %vm641_vm5, %v643_v33, %v639_v32 }
 0x163   : > { %v654_v34 = vpop.permute.xlu0 %653 }
 0x164   : > { %v656_v36 = vmul.f32 %v654_v34, %v644_v35 }
 0x166   : > { %658 = vrot.lane.b32.xlu1 %v656_v36, %s2103_s24 }
 0x16b   : > { %v649_v37 = vpop.permute.xlu0 %648 }
 0x16c   : > { %v651_v38 = vmul.f32 %v649_v37, %v644_v35 }
 0x175   : > { %v460_v25 = vpop.f32.mrf.mxu2 }
 0x176   : > { %v461_v26 = vadd.f32 %v2306_v12, %v460_v25 }
 0x178   : > { %464 = vst [vmem:[#allocation4 + $0x4] sm:$0x3] %v461_v26 }
 0x17f   : > { %v762_v31 = vld [vmem:[#allocation4 + $0x4] sm:$0x3] }
 0x180   : > { %v568_v29 = vpop.f32.mrf.mxu2 }
 0x181   : > { %v569_v30 = vadd.f32 %v2306_v12, %v568_v29 }
 0x183   : > { %572 = vst [vmem:[#allocation4 + $0xc] sm:$0x3] %v569_v30 }
 0x1d8   : > { %v659_v39 = vpop.permute.xlu1 %658 }
 0x1d9   : > { %v661_v40 = vadd.f32 %v659_v39, %v651_v38 }
 0x1db   : > { %1841 = vtanh.f32 %v661_v40 }
 0x1e1   : > { %v1842_v41 = vpop.eup %1841 }
 0x1e2   : > { %664 = vrot.lane.b32.xlu1 %v1842_v41, %s2102_s29 }
 0x254   : > { %v665_v43 = vpop.permute.xlu1 %664 }
 0x255   : > { %v667_v44 = vmul.f32 %v665_v43, %v644_v35 }
 0x257   : > { %675 = vrot.lane.b32.xlu2 %v667_v44, %s2103_s24 }
 0x25f   : > { %669 = vrot.lane.b32.xlu2 %v661_v40, %s2104_s8 }
 0x2b1   : > { %v676_v46 = vpop.permute.xlu2 %675 }
 0x2b2   : > { %678 = vst.msk [vmem:[#allocation2] sm:$0x3] %vm672_vm6, %v676_v46 }
 0x2b3   : > { %679 = vst.msk [vmem:[#allocation5] sm:$0x3] %vm672_vm6, %v676_v46 }
 0x2b9   : > { %v670_v47 = vpop.permute.xlu2 %669  ;;  %v680_v48 = vld [vmem:[#allocation2] sm:$0x3] }
 0x2ba   : > { %673 = vst.msk [vmem:[#allocation3] sm:$0x3] %vm672_vm6, %v670_v47  ;;  %1728 = vmatmul.msk.f32.vlgmr.msra.gmra.mxu1 %vm386_vm1, %v680_v48 }
 0x2c1   : > { %v681_v51 = vld [vmem:[#allocation3] sm:$0x3] }
 0x2c2   : > { %728 = vrot.lane.b32.xlu1 %v681_v51, %s2103_s24 }
 0x334   : > { %v729_v14 = vpop.permute.xlu1 %728 }
 0x337   : > { %v703_v55 = vpop.f32.mrf.mxu1 }
 0x338   : > { %v706_v56 = vadd.f32 %v703_v55, %v682_v54 }
 0x33a   : > { %1843 = vtanh.f32 %v706_v56  ;;  %v1729_v58 = vmul.f32 -1.442695, %v706_v56  ;;  %v1716_v56 = vld [vmem:[%s2252_s17 + $0x6] sm:$0x3] }
 0x33b   : > { %1717 = vmatmul.msk.f32.vlgmr.msra.gmra.mxu3 %vm386_vm1, %v1716_v56 }
 0x33c   : > { %1845 = vpow2.f32 %v1729_v58  ;;  %858 = vmatpush.msra.mxu3 %v2285_v7 }
 0x33e   : > { %859 = vmatpush.msra.mxu3 %v2288_v8 }
 0x340   : > { %v1844_v57 = vpop.eup %1843  ;;  %860 = vmatpush.msra.mxu3 %v2291_v9 }
 0x341   : > { %733 = vrot.lane.b32.xlu0 %v1844_v57, %s2102_s29 }
 0x342   : > { %v1846_v59 = vpop.eup %1845  ;;  %861 = vmatpush.msra.mxu3 %v2294_v10 }
 0x343   : > { %v710_v60 = vadd.f32 1.0, %v1846_v59 }
 0x345   : > { %1847 = vrcp.f32 %v710_v60  ;;  %v722_v2 = vand.u32 2147483648, %v710_v60  ;;  %vm716_vm8 = vweird.f32 %v710_v60  ;;  %v720_v3 = vand.u32 2147483647, %v710_v60 }
 0x347   : > { %v723_v5 = vor.u32 1.1754944e-38, %v722_v2  ;;  %vm721_vm10 = vcmp.eq.f32.partialorder %v720_v3, 8.507059e+37 }
 0x34b   : > { %v1848_v61 = vpop.eup %1847 }
 0x34c   : > { %v712_v62 = vmul.f32 %v1848_v61, %v710_v60  ;;  %vm717_vm7 = vweird.f32 %v1848_v61  ;;  %v1724_v60 = vld [vmem:[%s2252_s17 + $0xe] sm:$0x3] }
 0x34d   : > { %vm718_vm9 = vmor %vm716_vm8, %vm717_vm7  ;;  %1725 = vmatmul.msk.f32.vlgmr.msrb.gmra.mxu3 %vm386_vm1, %v1724_v60 }
 0x34e   : > { %v713_v63 = vsub.f32 1.0, %v712_v62  ;;  %1178 = vmatpush.msrb.mxu3 %v2285_v7 }
 0x350   : > { %v714_v0 = vmul.f32 %v1848_v61, %v713_v63  ;;  %1179 = vmatpush.msrb.mxu3 %v2288_v8 }
 0x352   : > { %v715_v1 = vadd.f32 %v1848_v61, %v714_v0  ;;  %1180 = vmatpush.msrb.mxu3 %v2291_v9 }
 0x354   : > { %v719_v4 = vsel %vm718_vm9, %v1848_v61, %v715_v1  ;;  %1181 = vmatpush.msrb.mxu3 %v2294_v10 }
 0x355   : > { %v724_v11 = vsel %vm721_vm10, %v723_v5, %v719_v4 }
 0x356   : > { %v731_v15 = vmul.f32 %v729_v14, %v724_v11 }
 0x3b3   : > { %v734_v6 = vpop.permute.xlu0 %733 }
 0x3b4   : > { %v736_v13 = vmul.f32 %v734_v6, %v724_v11 }
 0x3b6   : > { %738 = vrot.lane.b32.xlu2 %v736_v13, %s2103_s24 }
 0x3be   : > { %v487_v61 = vpop.f32.mrf.mxu3 }
 0x3bf   : > { %v488_v62 = vadd.f32 %v2306_v12, %v487_v61 }
 0x3c1   : > { %491 = vst [vmem:[#allocation4 + $0x6] sm:$0x3] %v488_v62 }
 0x3c8   : > { %v842_v8 = vld [vmem:[#allocation4 + $0x6] sm:$0x3] }
 0x3d0   : > { %v595_v1 = vpop.f32.mrf.mxu3 }
 0x3d1   : > { %v596_v7 = vadd.f32 %v2306_v12, %v595_v1 }
 0x3d3   : > { %599 = vst [vmem:[#allocation4 + $0xe] sm:$0x3] %v596_v7 }
 0x410   : > { %v739_v16 = vpop.permute.xlu2 %738 }
 0x411   : > { %v741_v17 = vadd.f32 %v739_v16, %v731_v15 }
 0x413   : > { %1849 = vtanh.f32 %v741_v17  ;;  %749 = vrot.lane.b32.xlu2 %v741_v17, %s2104_s8 }
 0x419   : > { %v1850_v18 = vpop.eup %1849 }
 0x41a   : > { %744 = vrot.lane.b32.xlu0 %v1850_v18, %s2102_s29 }
 0x46d   : > { %v750_v19 = vpop.permute.xlu2 %749 }
 0x46e   : > { %752 = vst.msk [vmem:[#allocation3] sm:$0x3] %vm672_vm6, %v750_v19 }
 0x475   : > { %v761_v23 = vld [vmem:[#allocation3] sm:$0x3] }
 0x48c   : > { %v745_v21 = vpop.permute.xlu0 %744 }
 0x48d   : > { %v747_v22 = vmul.f32 %v745_v21, %v724_v11 }
 0x48f   : > { %754 = vrot.lane.b32.xlu1 %v747_v22, %s2103_s24 }
 0x497   : > { %808 = vrot.lane.b32.xlu1 %v761_v23, %s2103_s24 }
 0x501   : > { %v755_v27 = vpop.permute.xlu1 %754 }
 0x502   : > { %757 = vst.msk [vmem:[#allocation2] sm:$0x3] %vm672_vm6, %v755_v27 }
 0x503   : > { %759 = vst.msk [vmem:[#allocation5 + $0x2] sm:$0x3] %vm672_vm6, %v755_v27 }
 0x509   : > { %v760_v28 = vld [vmem:[#allocation2] sm:$0x3]  ;;  %v809_v50 = vpop.permute.xlu1 %808 }
 0x50a   : > { %1730 = vmatmul.msk.f32.vlgmr.msra.gmra.mxu2 %vm386_vm1, %v760_v28 }
 0x58d   : > { %v783_v32 = vpop.f32.mrf.mxu2 }
 0x58e   : > { %v786_v33 = vadd.f32 %v783_v32, %v762_v31 }
 0x590   : > { %1851 = vtanh.f32 %v786_v33  ;;  %v1731_v35 = vmul.f32 -1.442695, %v786_v33  ;;  %v922_v33 = vld [vmem:[#allocation4 + $0x8] sm:$0x3] }
 0x592   : > { %1853 = vpow2.f32 %v1731_v35 }
 0x596   : > { %v1852_v34 = vpop.eup %1851 }
 0x597   : > { %813 = vrot.lane.b32.xlu0 %v1852_v34, %s2102_s29 }
 0x598   : > { %v1854_v36 = vpop.eup %1853 }
 0x599   : > { %v790_v37 = vadd.f32 1.0, %v1854_v36 }
 0x59b   : > { %1855 = vrcp.f32 %v790_v37  ;;  %v802_v43 = vand.u32 2147483648, %v790_v37  ;;  %vm796_vm12 = vweird.f32 %v790_v37  ;;  %v800_v44 = vand.u32 2147483647, %v790_v37 }
 0x59d   : > { %v803_v46 = vor.u32 1.1754944e-38, %v802_v43  ;;  %vm801_vm14 = vcmp.eq.f32.partialorder %v800_v44, 8.507059e+37 }
 0x5a1   : > { %v1856_v38 = vpop.eup %1855 }
 0x5a2   : > { %v792_v39 = vmul.f32 %v1856_v38, %v790_v37  ;;  %vm797_vm11 = vweird.f32 %v1856_v38 }
 0x5a3   : > { %vm798_vm13 = vmor %vm796_vm12, %vm797_vm11 }
 0x5a4   : > { %v793_v40 = vsub.f32 1.0, %v792_v39 }
 0x5a6   : > { %v794_v41 = vmul.f32 %v1856_v38, %v793_v40 }
 0x5a8   : > { %v795_v42 = vadd.f32 %v1856_v38, %v794_v41 }
 0x5aa   : > { %v799_v45 = vsel %vm798_vm13, %v1856_v38, %v795_v42 }
 0x5ab   : > { %v804_v48 = vsel %vm801_vm14, %v803_v46, %v799_v45 }
 0x5ac   : > { %v811_v51 = vmul.f32 %v809_v50, %v804_v48 }
 0x609   : > { %v814_v47 = vpop.permute.xlu0 %813 }
 0x60a   : > { %v816_v49 = vmul.f32 %v814_v47, %v804_v48 }
 0x60c   : > { %818 = vrot.lane.b32.xlu2 %v816_v49, %s2103_s24 }
 0x666   : > { %v819_v52 = vpop.permute.xlu2 %818 }
 0x667   : > { %v821_v53 = vadd.f32 %v819_v52, %v811_v51 }
 0x669   : > { %1857 = vtanh.f32 %v821_v53  ;;  %829 = vrot.lane.b32.xlu2 %v821_v53, %s2104_s8 }
 0x66f   : > { %v1858_v54 = vpop.eup %1857 }
 0x670   : > { %824 = vrot.lane.b32.xlu0 %v1858_v54, %s2102_s29 }
 0x6c3   : > { %v830_v55 = vpop.permute.xlu2 %829 }
 0x6c4   : > { %832 = vst.msk [vmem:[#allocation3] sm:$0x3] %vm672_vm6, %v830_v55 }
 0x6cb   : > { %v841_v59 = vld [vmem:[#allocation3] sm:$0x3] }
 0x6e2   : > { %v825_v57 = vpop.permute.xlu0 %824 }
 0x6e3   : > { %v827_v58 = vmul.f32 %v825_v57, %v804_v48 }
 0x6e5   : > { %834 = vrot.lane.b32.xlu1 %v827_v58, %s2103_s24 }
 0x6ed   : > { %888 = vrot.lane.b32.xlu1 %v841_v59, %s2103_s24 }
 0x757   : > { %v835_v63 = vpop.permute.xlu1 %834 }
 0x758   : > { %837 = vst.msk [vmem:[#allocation2] sm:$0x3] %vm672_vm6, %v835_v63 }
 0x759   : > { %839 = vst.msk [vmem:[#allocation5 + $0x4] sm:$0x3] %vm672_vm6, %v835_v63  ;;  %v1002_v63 = vld [vmem:[#allocation4 + $0xa] sm:$0x3] }
 0x75f   : > { %v840_v0 = vld [vmem:[#allocation2] sm:$0x3]  ;;  %v889_v22 = vpop.permute.xlu1 %888 }
 0x760   : > { %1732 = vmatmul.msk.f32.vlgmr.msra.gmra.mxu3 %vm386_vm1, %v840_v0 }
 0x7e3   : > { %v863_v9 = vpop.f32.mrf.mxu3 }
 0x7e4   : > { %v866_v2 = vadd.f32 %v863_v9, %v842_v8 }
 0x7e6   : > { %1859 = vtanh.f32 %v866_v2  ;;  %v1733_v3 = vmul.f32 -1.442695, %v866_v2 }
 0x7e8   : > { %1861 = vpow2.f32 %v1733_v3 }
 0x7ec   : > { %v1860_v10 = vpop.eup %1859 }
 0x7ed   : > { %893 = vrot.lane.b32.xlu0 %v1860_v10, %s2102_s29 }
 0x7ee   : > { %v1862_v4 = vpop.eup %1861 }
 0x7ef   : > { %v870_v5 = vadd.f32 1.0, %v1862_v4 }
 0x7f1   : > { %1863 = vrcp.f32 %v870_v5  ;;  %v882_v12 = vand.u32 2147483648, %v870_v5  ;;  %vm876_vm0 = vweird.f32 %v870_v5  ;;  %v880_v16 = vand.u32 2147483647, %v870_v5 }
 0x7f3   : > { %v883_v18 = vor.u32 1.1754944e-38, %v882_v12  ;;  %vm881_vm3 = vcmp.eq.f32.partialorder %v880_v16, 8.507059e+37 }
 0x7f7   : > { %v1864_v6 = vpop.eup %1863 }
 0x7f8   : > { %v872_v11 = vmul.f32 %v1864_v6, %v870_v5  ;;  %vm877_vm15 = vweird.f32 %v1864_v6 }
 0x7f9   : > { %vm878_vm2 = vmor %vm876_vm0, %vm877_vm15 }
 0x7fa   : > { %v873_v13 = vsub.f32 1.0, %v872_v11 }
 0x7fc   : > { %v874_v14 = vmul.f32 %v1864_v6, %v873_v13 }
 0x7fe   : > { %v875_v15 = vadd.f32 %v1864_v6, %v874_v14 }
 0x800   : > { %v879_v17 = vsel %vm878_vm2, %v1864_v6, %v875_v15 }
 0x801   : > { %v884_v20 = vsel %vm881_vm3, %v883_v18, %v879_v17 }
 0x802   : > { %v891_v23 = vmul.f32 %v889_v22, %v884_v20 }
 0x85f   : > { %v894_v19 = vpop.permute.xlu0 %893 }
 0x860   : > { %v896_v21 = vmul.f32 %v894_v19, %v884_v20 }
 0x862   : > { %898 = vrot.lane.b32.xlu2 %v896_v21, %s2103_s24 }
 0x8bc   : > { %v899_v24 = vpop.permute.xlu2 %898 }
 0x8bd   : > { %v901_v25 = vadd.f32 %v899_v24, %v891_v23 }
 0x8bf   : > { %1865 = vtanh.f32 %v901_v25  ;;  %909 = vrot.lane.b32.xlu2 %v901_v25, %s2104_s8 }
 0x8c5   : > { %v1866_v26 = vpop.eup %1865 }
 0x8c6   : > { %904 = vrot.lane.b32.xlu0 %v1866_v26, %s2102_s29 }
 0x919   : > { %v910_v27 = vpop.permute.xlu2 %909 }
 0x91a   : > { %912 = vst.msk [vmem:[#allocation3] sm:$0x3] %vm672_vm6, %v910_v27 }
 0x921   : > { %v921_v30 = vld [vmem:[#allocation3] sm:$0x3] }
 0x938   : > { %v905_v28 = vpop.permute.xlu0 %904 }
 0x939   : > { %v907_v29 = vmul.f32 %v905_v28, %v884_v20 }
 0x93b   : > { %914 = vrot.lane.b32.xlu1 %v907_v29, %s2103_s24  ;;  %v1082_v29 = vld [vmem:[#allocation4 + $0xc] sm:$0x3] }
 0x943   : > { %968 = vrot.lane.b32.xlu1 %v921_v30, %s2103_s24 }
 0x9ad   : > { %v915_v31 = vpop.permute.xlu1 %914 }
 0x9ae   : > { %917 = vst.msk [vmem:[#allocation2] sm:$0x3] %vm672_vm6, %v915_v31 }
 0x9af   : > { %919 = vst.msk [vmem:[#allocation5 + $0x6] sm:$0x3] %vm672_vm6, %v915_v31 }
 0x9b5   : > { %v920_v32 = vld [vmem:[#allocation2] sm:$0x3]  ;;  %v969_v52 = vpop.permute.xlu1 %968 }
 0x9b6   : > { %1734 = vmatmul.msk.f32.vlgmr.msrb.gmra.mxu0 %vm386_vm1, %v920_v32 }
 0xa33   : > { %v943_v34 = vpop.f32.mrf.mxu0 }
 0xa34   : > { %v946_v35 = vadd.f32 %v943_v34, %v922_v33 }
 0xa36   : > { %1867 = vtanh.f32 %v946_v35  ;;  %v1735_v37 = vmul.f32 -1.442695, %v946_v35 }
 0xa38   : > { %1869 = vpow2.f32 %v1735_v37 }
 0xa3c   : > { %v1868_v36 = vpop.eup %1867 }
 0xa3d   : > { %973 = vrot.lane.b32.xlu0 %v1868_v36, %s2102_s29 }
 0xa3e   : > { %v1870_v38 = vpop.eup %1869 }
 0xa3f   : > { %v950_v39 = vadd.f32 1.0, %v1870_v38 }
 0xa41   : > { %1871 = vrcp.f32 %v950_v39  ;;  %v962_v45 = vand.u32 2147483648, %v950_v39  ;;  %vm956_vm5 = vweird.f32 %v950_v39  ;;  %v960_v46 = vand.u32 2147483647, %v950_v39 }
 0xa43   : > { %v963_v48 = vor.u32 1.1754944e-38, %v962_v45  ;;  %vm961_vm8 = vcmp.eq.f32.partialorder %v960_v46, 8.507059e+37 }
 0xa47   : > { %v1872_v40 = vpop.eup %1871 }
 0xa48   : > { %v952_v41 = vmul.f32 %v1872_v40, %v950_v39  ;;  %vm957_vm4 = vweird.f32 %v1872_v40 }
 0xa49   : > { %vm958_vm7 = vmor %vm956_vm5, %vm957_vm4 }
 0xa4a   : > { %v953_v42 = vsub.f32 1.0, %v952_v41 }
 0xa4c   : > { %v954_v43 = vmul.f32 %v1872_v40, %v953_v42 }
 0xa4e   : > { %v955_v44 = vadd.f32 %v1872_v40, %v954_v43 }
 0xa50   : > { %v959_v47 = vsel %vm958_vm7, %v1872_v40, %v955_v44 }
 0xa51   : > { %v964_v50 = vsel %vm961_vm8, %v963_v48, %v959_v47 }
 0xa52   : > { %v971_v53 = vmul.f32 %v969_v52, %v964_v50 }
 0xaaf   : > { %v974_v49 = vpop.permute.xlu0 %973 }
 0xab0   : > { %v976_v51 = vmul.f32 %v974_v49, %v964_v50 }
 0xab2   : > { %978 = vrot.lane.b32.xlu2 %v976_v51, %s2103_s24 }
 0xb0c   : > { %v979_v54 = vpop.permute.xlu2 %978 }
 0xb0d   : > { %v981_v55 = vadd.f32 %v979_v54, %v971_v53 }
 0xb0f   : > { %1873 = vtanh.f32 %v981_v55  ;;  %989 = vrot.lane.b32.xlu2 %v981_v55, %s2104_s8 }
 0xb15   : > { %v1874_v56 = vpop.eup %1873 }
 0xb16   : > { %984 = vrot.lane.b32.xlu0 %v1874_v56, %s2102_s29 }
 0xb69   : > { %v990_v57 = vpop.permute.xlu2 %989 }
 0xb6a   : > { %992 = vst.msk [vmem:[#allocation3] sm:$0x3] %vm672_vm6, %v990_v57  ;;  %v1241_v57 = vld [vmem:[%s2262_s1 + $0x2] sm:$0x3] }
 0xb71   : > { %v1001_v60 = vld [vmem:[#allocation3] sm:$0x3] }
 0xb88   : > { %v985_v58 = vpop.permute.xlu0 %984 }
 0xb89   : > { %v987_v59 = vmul.f32 %v985_v58, %v964_v50  ;;  %v1249_v58 = vld [vmem:[#allocation5 + $0x2] sm:$0x3] }
 0xb8b   : > { %994 = vrot.lane.b32.xlu1 %v987_v59, %s2103_s24  ;;  %v1257_v59 = vmul.f32 %v1249_v58, %v1241_v57 }
 0xb93   : > { %1048 = vrot.lane.b32.xlu1 %v1001_v60, %s2103_s24  ;;  %v1267_v60 = vsel %vm672_vm6, %v1257_v59, 0.0 }
 0xbfd   : > { %v995_v61 = vpop.permute.xlu1 %994 }
 0xbfe   : > { %997 = vst.msk [vmem:[#allocation2] sm:$0x3] %vm672_vm6, %v995_v61 }
 0xbff   : > { %999 = vst.msk [vmem:[#allocation5 + $0x8] sm:$0x3] %vm672_vm6, %v995_v61 }
 0xc05   : > { %v1000_v62 = vld [vmem:[#allocation2] sm:$0x3]  ;;  %v1049_v18 = vpop.permute.xlu1 %1048 }
 0xc06   : > { %1736 = vmatmul.msk.f32.vlgmr.msrb.gmra.mxu1 %vm386_vm1, %v1000_v62 }
 0xc83   : > { %v1023_v0 = vpop.f32.mrf.mxu1 }
 0xc84   : > { %v1026_v1 = vadd.f32 %v1023_v0, %v1002_v63  ;;  %v1162_v63 = vld [vmem:[#allocation4 + $0xe] sm:$0x3] }
 0xc86   : > { %1875 = vtanh.f32 %v1026_v1  ;;  %v1737_v8 = vmul.f32 -1.442695, %v1026_v1 }
 0xc88   : > { %1877 = vpow2.f32 %v1737_v8 }
 0xc8c   : > { %v1876_v7 = vpop.eup %1875 }
 0xc8d   : > { %1053 = vrot.lane.b32.xlu0 %v1876_v7, %s2102_s29 }
 0xc8e   : > { %v1878_v9 = vpop.eup %1877 }
 0xc8f   : > { %v1030_v2 = vadd.f32 1.0, %v1878_v9 }
 0xc91   : > { %1879 = vrcp.f32 %v1030_v2  ;;  %v1042_v11 = vand.u32 2147483648, %v1030_v2  ;;  %vm1036_vm10 = vweird.f32 %v1030_v2  ;;  %v1040_v13 = vand.u32 2147483647, %v1030_v2 }
 0xc93   : > { %v1043_v15 = vor.u32 1.1754944e-38, %v1042_v11  ;;  %vm1041_vm12 = vcmp.eq.f32.partialorder %v1040_v13, 8.507059e+37 }
 0xc97   : > { %v1880_v10 = vpop.eup %1879 }
 0xc98   : > { %v1032_v3 = vmul.f32 %v1880_v10, %v1030_v2  ;;  %vm1037_vm9 = vweird.f32 %v1880_v10 }
 0xc99   : > { %vm1038_vm11 = vmor %vm1036_vm10, %vm1037_vm9 }
 0xc9a   : > { %v1033_v4 = vsub.f32 1.0, %v1032_v3 }
 0xc9c   : > { %v1034_v5 = vmul.f32 %v1880_v10, %v1033_v4 }
 0xc9e   : > { %v1035_v6 = vadd.f32 %v1880_v10, %v1034_v5 }
 0xca0   : > { %v1039_v14 = vsel %vm1038_vm11, %v1880_v10, %v1035_v6 }
 0xca1   : > { %v1044_v16 = vsel %vm1041_vm12, %v1043_v15, %v1039_v14 }
 0xca2   : > { %v1051_v19 = vmul.f32 %v1049_v18, %v1044_v16 }
 0xcff   : > { %v1054_v12 = vpop.permute.xlu0 %1053 }
 0xd00   : > { %v1056_v17 = vmul.f32 %v1054_v12, %v1044_v16 }
 0xd02   : > { %1058 = vrot.lane.b32.xlu2 %v1056_v17, %s2103_s24 }
 0xd5c   : > { %v1059_v20 = vpop.permute.xlu2 %1058 }
 0xd5d   : > { %v1061_v21 = vadd.f32 %v1059_v20, %v1051_v19 }
 0xd5f   : > { %1881 = vtanh.f32 %v1061_v21  ;;  %1069 = vrot.lane.b32.xlu2 %v1061_v21, %s2104_s8 }
 0xd65   : > { %v1882_v22 = vpop.eup %1881 }
 0xd66   : > { %1064 = vrot.lane.b32.xlu0 %v1882_v22, %s2102_s29 }
 0xdb9   : > { %v1070_v23 = vpop.permute.xlu2 %1069 }
 0xdba   : > { %1072 = vst.msk [vmem:[#allocation3] sm:$0x3] %vm672_vm6, %v1070_v23  ;;  %v1291_v23 = vlaneseq }
 0xdc1   : > { %v1081_v26 = vld [vmem:[#allocation3] sm:$0x3] }
 0xdd8   : > { %v1065_v24 = vpop.permute.xlu0 %1064 }
 0xdd9   : > { %v1067_v25 = vmul.f32 %v1065_v24, %v1044_v16  ;;  %v1292_v24 = vshrl.u32 %v1291_v23, 7 }
 0xddb   : > { %1074 = vrot.lane.b32.xlu1 %v1067_v25, %s2103_s24  ;;  %1828 = vset.pattern.permute.xlu2 %v1292_v24  ;;  %v1242_v25 = vld [vmem:[%s2262_s1 + $0x4] sm:$0x3] }
 0xddc   : > { %1830 = vset.pattern.permute.xlu0 %v1292_v24  ;;  %1829 = vset.pattern.permute.xlu1 %v1292_v24 }
 0xde3   : > { %1128 = vrot.lane.b32.xlu1 %v1081_v26, %s2103_s24  ;;  %v1250_v26 = vld [vmem:[#allocation5 + $0x4] sm:$0x3] }
 0xe4d   : > { %v1075_v27 = vpop.permute.xlu1 %1074 }
 0xe4e   : > { %1077 = vst.msk [vmem:[#allocation2] sm:$0x3] %vm672_vm6, %v1075_v27 }
 0xe4f   : > { %1079 = vst.msk [vmem:[#allocation5 + $0xa] sm:$0x3] %vm672_vm6, %v1075_v27  ;;  %v1258_v27 = vmul.f32 %v1250_v26, %v1242_v25 }
 0xe55   : > { %v1080_v28 = vld [vmem:[#allocation2] sm:$0x3]  ;;  %v1129_v48 = vpop.permute.xlu1 %1128 }
 0xe56   : > { %1738 = vmatmul.msk.f32.vlgmr.msrb.gmra.mxu2 %vm386_vm1, %v1080_v28  ;;  %v1270_v28 = vsel %vm672_vm6, %v1258_v27, 0.0 }
 0xed9   : > { %v1103_v30 = vpop.f32.mrf.mxu2 }
 0xeda   : > { %v1106_v31 = vadd.f32 %v1103_v30, %v1082_v29  ;;  %v1240_v29 = vld [vmem:[%s2262_s1] sm:$0x3]  ;;  %v1243_v30 = vld [vmem:[%s2262_s1 + $0x6] sm:$0x3] }
 0xedc   : > { %1883 = vtanh.f32 %v1106_v31  ;;  %v1739_v33 = vmul.f32 -1.442695, %v1106_v31  ;;  %v1251_v31 = vld [vmem:[#allocation5 + $0x6] sm:$0x3] }
 0xede   : > { %1885 = vpow2.f32 %v1739_v33  ;;  %v1259_v33 = vmul.f32 %v1251_v31, %v1243_v30 }
 0xee2   : > { %v1884_v32 = vpop.eup %1883 }
 0xee3   : > { %1133 = vrot.lane.b32.xlu0 %v1884_v32, %s2102_s29  ;;  %v1248_v32 = vld [vmem:[#allocation5] sm:$0x3] }
 0xee4   : > { %v1886_v34 = vpop.eup %1885 }
 0xee5   : > { %v1110_v35 = vadd.f32 1.0, %v1886_v34  ;;  %v1256_v34 = vmul.f32 %v1248_v32, %v1240_v29 }
 0xee7   : > { %1887 = vrcp.f32 %v1110_v35  ;;  %v1122_v41 = vand.u32 2147483648, %v1110_v35  ;;  %vm1116_vm14 = vweird.f32 %v1110_v35  ;;  %v1120_v42 = vand.u32 2147483647, %v1110_v35 }
 0xee9   : > { %v1123_v44 = vor.u32 1.1754944e-38, %v1122_v41  ;;  %vm1121_vm0 = vcmp.eq.f32.partialorder %v1120_v42, 8.507059e+37  ;;  %v2439_v41 = vld [vmem:[%s2273_s28] sm:$0xff] }
 0xeea   : > { %v1304_v42 = vperm.slane %v2439_v41, 2  ;;  %v1339_v59 = vperm.slane %v2439_v41, 7 }
 0xeed   : > { %v1888_v36 = vpop.eup %1887 }
 0xeee   : > { %v1112_v37 = vmul.f32 %v1888_v36, %v1110_v35  ;;  %vm1117_vm13 = vweird.f32 %v1888_v36  ;;  %v1273_v35 = vsel %vm672_vm6, %v1259_v33, 0.0 }
 0xeef   : > { %vm1118_vm15 = vmor %vm1116_vm14, %vm1117_vm13 }
 0xef0   : > { %v1113_v38 = vsub.f32 1.0, %v1112_v37  ;;  %v1246_v37 = vld [vmem:[%s2262_s1 + $0xc] sm:$0x3] }
 0xef2   : > { %v1114_v39 = vmul.f32 %v1888_v36, %v1113_v38 }
 0xef4   : > { %v1115_v40 = vadd.f32 %v1888_v36, %v1114_v39 }
 0xef6   : > { %v1119_v43 = vsel %vm1118_vm15, %v1888_v36, %v1115_v40  ;;  %v1264_v36 = vsel %vm672_vm6, %v1256_v34, 0.0 }
 0xef7   : > { %v1124_v46 = vsel %vm1121_vm0, %v1123_v44, %v1119_v43  ;;  %v1290_v43 = vperm.slane %v2439_v41, 0  ;;  %v1311_v44 = vperm.slane %v2439_v41, 3 }
 0xef8   : > { %v1131_v49 = vmul.f32 %v1129_v48, %v1124_v46 }
 0xf55   : > { %v1134_v45 = vpop.permute.xlu0 %1133 }
 0xf56   : > { %v1136_v47 = vmul.f32 %v1134_v45, %v1124_v46 }
 0xf58   : > { %1138 = vrot.lane.b32.xlu2 %v1136_v47, %s2103_s24  ;;  %v1253_v47 = vld [vmem:[#allocation5 + $0xa] sm:$0x3] }
 0xfb2   : > { %v1139_v50 = vpop.permute.xlu2 %1138 }
 0xfb3   : > { %v1141_v51 = vadd.f32 %v1139_v50, %v1131_v49 }
 0xfb5   : > { %1889 = vtanh.f32 %v1141_v51  ;;  %1149 = vrot.lane.b32.xlu2 %v1141_v51, %s2104_s8 }
 0xfbb   : > { %v1890_v52 = vpop.eup %1889 }
 0xfbc   : > { %1144 = vrot.lane.b32.xlu0 %v1890_v52, %s2102_s29  ;;  %v1318_v52 = vperm.slane %v2439_v41, 4 }
0x100f   : > { %v1150_v53 = vpop.permute.xlu2 %1149 }
0x1010   : > { %1152 = vst.msk [vmem:[#allocation3] sm:$0x3] %vm672_vm6, %v1150_v53 }
0x1017   : > { %v1161_v56 = vld [vmem:[#allocation3] sm:$0x3] }
0x102e   : > { %v1145_v54 = vpop.permute.xlu0 %1144 }
0x102f   : > { %v1147_v55 = vmul.f32 %v1145_v54, %v1124_v46  ;;  %v1245_v46 = vld [vmem:[%s2262_s1 + $0xa] sm:$0x3]  ;;  %v1244_v54 = vld [vmem:[%s2262_s1 + $0x8] sm:$0x3] }
0x1030   : > { %v1261_v48 = vmul.f32 %v1253_v47, %v1245_v46 }
0x1031   : > { %1154 = vrot.lane.b32.xlu1 %v1147_v55, %s2103_s24  ;;  %v1252_v55 = vld [vmem:[#allocation5 + $0x8] sm:$0x3] }
0x1032   : > { %v1279_v50 = vsel %vm672_vm6, %v1261_v48, 0.0 }
0x1039   : > { %1208 = vrot.lane.b32.xlu1 %v1161_v56, %s2103_s24  ;;  %v1260_v56 = vmul.f32 %v1252_v55, %v1244_v54 }
0x103b   : > { %v1276_v58 = vsel %vm672_vm6, %v1260_v56, 0.0 }
0x1063   : > { %1268 = vadd.xlane.f32.xlu1 %v1267_v60 }
0x10a3   : > { %v1155_v61 = vpop.permute.xlu1 %1154 }
0x10a4   : > { %1157 = vst.msk [vmem:[#allocation2] sm:$0x3] %vm672_vm6, %v1155_v61 }
0x10a5   : > { %1159 = vst.msk [vmem:[#allocation5 + $0xc] sm:$0x3] %vm672_vm6, %v1155_v61 }
0x10ab   : > { %v1160_v62 = vld [vmem:[#allocation2] sm:$0x3]  ;;  %v1209_v18 = vpop.permute.xlu1 %1208 }
0x10ac   : > { %1740 = vmatmul.msk.f32.vlgmr.msrb.gmra.mxu3 %vm386_vm1, %v1160_v62  ;;  %v1254_v38 = vld [vmem:[#allocation5 + $0xc] sm:$0x3] }
0x10ad   : > { %v1262_v39 = vmul.f32 %v1254_v38, %v1246_v37 }
0x10af   : > { %v1282_v40 = vsel %vm672_vm6, %v1262_v39, 0.0 }
0x10d6   : > { %v1269_v34 = vpop.xlane.xlu1 %1268 }
0x112f   : > { %v1183_v0 = vpop.f32.mrf.mxu3 }
0x1130   : > { %v1186_v1 = vadd.f32 %v1183_v0, %v1162_v63  ;;  %v2105_v63 = vmov 0  }
0x1132   : > { %1891 = vtanh.f32 %v1186_v1  ;;  %v1741_v8 = vmul.f32 -1.442695, %v1186_v1 }
0x1134   : > { %1893 = vpow2.f32 %v1741_v8 }
0x1138   : > { %v1892_v7 = vpop.eup %1891 }
0x1139   : > { %1213 = vrot.lane.b32.xlu0 %v1892_v7, %s2102_s29 }
0x113a   : > { %v1894_v9 = vpop.eup %1893 }
0x113b   : > { %v1190_v2 = vadd.f32 1.0, %v1894_v9  ;;  %v1297_v9 = vperm.slane %v2439_v41, 1 }
0x113d   : > { %1895 = vrcp.f32 %v1190_v2  ;;  %v1202_v11 = vand.u32 2147483648, %v1190_v2  ;;  %vm1196_vm1 = vweird.f32 %v1190_v2  ;;  %v1200_v13 = vand.u32 2147483647, %v1190_v2 }
0x113f   : > { %v1203_v15 = vor.u32 1.1754944e-38, %v1202_v11  ;;  %vm1201_vm4 = vcmp.eq.f32.partialorder %v1200_v13, 8.507059e+37 }
0x1143   : > { %v1896_v10 = vpop.eup %1895 }
0x1144   : > { %v1192_v3 = vmul.f32 %v1896_v10, %v1190_v2  ;;  %vm1197_vm2 = vweird.f32 %v1896_v10 }
0x1145   : > { %vm1198_vm3 = vmor %vm1196_vm1, %vm1197_vm2 }
0x1146   : > { %v1193_v4 = vsub.f32 1.0, %v1192_v3 }
0x1148   : > { %v1194_v5 = vmul.f32 %v1896_v10, %v1193_v4 }
0x114a   : > { %v1195_v6 = vadd.f32 %v1896_v10, %v1194_v5 }
0x114c   : > { %v1199_v14 = vsel %vm1198_vm3, %v1896_v10, %v1195_v6  ;;  %v1325_v6 = vperm.slane %v2439_v41, 5 }
0x114d   : > { %v1204_v16 = vsel %vm1201_vm4, %v1203_v15, %v1199_v14 }
0x114e   : > { %v1211_v19 = vmul.f32 %v1209_v18, %v1204_v16 }
0x11ab   : > { %v1214_v12 = vpop.permute.xlu0 %1213 }
0x11ac   : > { %v1216_v17 = vmul.f32 %v1214_v12, %v1204_v16 }
0x11ae   : > { %1218 = vrot.lane.b32.xlu2 %v1216_v17, %s2103_s24 }
0x1208   : > { %v1219_v20 = vpop.permute.xlu2 %1218 }
0x1209   : > { %v1221_v21 = vadd.f32 %v1219_v20, %v1211_v19 }
0x120b   : > { %1897 = vtanh.f32 %v1221_v21  ;;  %1229 = vrot.lane.b32.xlu2 %v1221_v21, %s2104_s8 }
0x1211   : > { %v1898_v22 = vpop.eup %1897 }
0x1212   : > { %1224 = vrot.lane.b32.xlu0 %v1898_v22, %s2102_s29 }
0x1234   : > { %1271 = vadd.xlane.f32.xlu2 %v1270_v28 }
0x123c   : > { %1274 = vadd.xlane.f32.xlu2 %v1273_v35  ;;  %1265 = vadd.xlane.f32.xlu0 %v1264_v36  ;;  %v1247_v36 = vld [vmem:[%s2262_s1 + $0xe] sm:$0x3] }
0x1244   : > { %1283 = vadd.xlane.f32.xlu0 %v1282_v40  ;;  %v1332_v40 = vperm.slane %v2439_v41, 6 }
0x1254   : > { %1309 = vperm.xlu2 %1828, %v1304_v42  }
0x1258   : > { %1295 = vperm.xlu0 %1830, %v1290_v43  }
0x125c   : > { %1316 = vperm.xlu2 %1828, %v1311_v44  }
0x1260   : > { %1323 = vperm.xlu0 %1830, %v1318_v52  }
0x1265   : > { %v1230_v45 = vpop.permute.xlu2 %1229 }
0x1266   : > { %1232 = vst.msk [vmem:[#allocation3] sm:$0x3] %vm672_vm6, %v1230_v45 }
0x1268   : > { %1344 = vperm.xlu0 %1830, %v1339_v59  }
0x1270   : > { %1832 = vset.pattern.permute.xlu0 %v2105_v63 }
0x1284   : > { %v1225_v49 = vpop.permute.xlu0 %1224 }
0x1285   : > { %v1227_v51 = vmul.f32 %v1225_v49, %v1204_v16  ;;  %1280 = vadd.xlane.f32.xlu2 %v1279_v50 }
0x1287   : > { %1234 = vrot.lane.b32.xlu1 %v1227_v51, %s2103_s24 }
0x12a7   : > { %v1272_v53 = vpop.xlane.xlu2 %1271 }
0x12af   : > { %v1275_v57 = vpop.xlane.xlu2 %1274  ;;  %v1266_v61 = vpop.xlane.xlu0 %1265 }
0x12b1   : > { %1277 = vadd.xlane.f32.xlu1 %v1276_v58 }
0x12b7   : > { %v1310_v60 = vpop.permute.xlu2 %1309  ;;  %v2455_v7 = vpop.xlane.xlu0 %1283 }
0x12b8   : > { %v2452_v62 = vadd.f32 %v1310_v60, %v1272_v53 }
0x12ba   : > { %v1744_v48 = vmul.f32 -1.442695, %v2452_v62 }
0x12bf   : > { %v1317_v0 = vpop.permute.xlu2 %1316 }
0x12c0   : > { %v1357_v1 = vadd.f32 %v1317_v0, %v1275_v57 }
0x12c2   : > { %v1745_v8 = vmul.f32 -1.442695, %v1357_v1 }
0x12c4   : > { %1899 = vpow2.f32 %v1745_v8 }
0x12ca   : > { %v1900_v2 = vpop.eup %1899  ;;  %1302 = vperm.xlu1 %1829, %v1297_v9   ;;  %v1296_v10 = vpop.permute.xlu0 %1295 }
0x12cb   : > { %v1389_v3 = vadd.f32 1.0, %v1900_v2  ;;  %v1354_v4 = vadd.f32 %v1296_v10, %v1266_v61 }
0x12cd   : > { %1901 = vrcp.f32 %v1389_v3  ;;  %v1742_v5 = vmul.f32 -1.442695, %v1354_v4  ;;  %v1450_v16 = vand.u32 2147483648, %v1389_v3  ;;  %v1448_v18 = vand.u32 2147483647, %v1389_v3 }
0x12ce   : > { %vm1444_vm7 = vweird.f32 %v1389_v3 }
0x12cf   : > { %1903 = vpow2.f32 %v1742_v5  ;;  %v1451_v20 = vor.u32 1.1754944e-38, %v1450_v16  ;;  %vm1449_vm9 = vcmp.eq.f32.partialorder %v1448_v18, 8.507059e+37 }
0x12d2   : > { %1330 = vperm.xlu1 %1829, %v1325_v6   ;;  %v1324_v42 = vpop.permute.xlu0 %1323 }
0x12d3   : > { %v1902_v11 = vpop.eup %1901 }
0x12d4   : > { %v1440_v13 = vmul.f32 %v1902_v11, %v1389_v3  ;;  %vm1445_vm5 = vweird.f32 %v1902_v11 }
0x12d5   : > { %v1904_v14 = vpop.eup %1903  ;;  %vm1446_vm8 = vmor %vm1444_vm7, %vm1445_vm5 }
0x12d6   : > { %v1386_v15 = vadd.f32 1.0, %v1904_v14  ;;  %v1441_v12 = vsub.f32 1.0, %v1440_v13 }
0x12d8   : > { %1905 = vrcp.f32 %v1386_v15  ;;  %v1442_v17 = vmul.f32 %v1902_v11, %v1441_v12  ;;  %v1405_v27 = vand.u32 2147483648, %v1386_v15  ;;  %v1403_v29 = vand.u32 2147483647, %v1386_v15 }
0x12d9   : > { %vm1399_vm11 = vweird.f32 %v1386_v15 }
0x12da   : > { %v1443_v19 = vadd.f32 %v1902_v11, %v1442_v17  ;;  %1831 = vset.pattern.permute.xlu1 %v2105_v63  ;;  %v1406_v31 = vor.u32 1.1754944e-38, %v1405_v27  ;;  %vm1404_vm13 = vcmp.eq.f32.partialorder %v1403_v29, 8.507059e+37 }
0x12dc   : > { %v1447_v21 = vsel %vm1446_vm8, %v1902_v11, %v1443_v19 }
0x12dd   : > { %v1452_v22 = vsel %vm1449_vm9, %v1451_v20, %v1447_v21 }
0x12de   : > { %v1906_v24 = vpop.eup %1905  ;;  %1532 = vperm.xlu0 %1832, %v1452_v22  }
0x12df   : > { %v1395_v25 = vmul.f32 %v1906_v24, %v1386_v15  ;;  %vm1400_vm10 = vweird.f32 %v1906_v24 }
0x12e0   : > { %vm1401_vm12 = vmor %vm1399_vm11, %vm1400_vm10 }
0x12e1   : > { %v1396_v26 = vsub.f32 1.0, %v1395_v25 }
0x12e3   : > { %v1397_v28 = vmul.f32 %v1906_v24, %v1396_v26 }
0x12e5   : > { %v1398_v30 = vadd.f32 %v1906_v24, %v1397_v28 }
0x12e7   : > { %v1402_v32 = vsel %vm1401_vm12, %v1906_v24, %v1398_v30 }
0x12e8   : > { %v1407_v33 = vsel %vm1404_vm13, %v1406_v31, %v1402_v32 }
0x12e9   : > { %1523 = vperm.xlu1 %1831, %v1407_v33  }
0x12f9   : > { %v1235_v35 = vpop.permute.xlu1 %1234 }
0x12fa   : > { %1237 = vst.msk [vmem:[#allocation2] sm:$0x3] %vm672_vm6, %v1235_v35 }
0x12fb   : > { %1239 = vst.msk [vmem:[#allocation5 + $0xe] sm:$0x3] %vm672_vm6, %v1235_v35 }
0x1302   : > { %v1255_v37 = vld [vmem:[#allocation5 + $0xe] sm:$0x3] }
0x1303   : > { %v1263_v38 = vmul.f32 %v1255_v37, %v1247_v36 }
0x1305   : > { %v1285_v39 = vsel %vm672_vm6, %v1263_v38, 0.0 }
0x1306   : > { %1286 = vadd.xlane.f32.xlu2 %v1285_v39  ;;  %v1345_v39 = vpop.permute.xlu0 %1344 }
0x131e   : > { %1337 = vperm.xlu2 %1828, %v1332_v40  }
0x1324   : > { %v1278_v43 = vpop.xlane.xlu1 %1277 }
0x1325   : > { %v1358_v44 = vadd.f32 %v1324_v42, %v1278_v43 }
0x1326   : > { %1833 = vset.pattern.permute.xlu2 %v2105_v63  ;;  %v1281_v63 = vpop.xlane.xlu2 %1280 }
0x1327   : > { %v1746_v45 = vmul.f32 -1.442695, %v1358_v44 }
0x1329   : > { %1907 = vpow2.f32 %v1746_v45 }
0x132f   : > { %v1908_v46 = vpop.eup %1907 }
0x1330   : > { %v1390_v47 = vadd.f32 1.0, %v1908_v46 }
0x1332   : > { %1909 = vrcp.f32 %v1390_v47  ;;  %v1465_v53 = vand.u32 2147483648, %v1390_v47  ;;  %v1463_v55 = vand.u32 2147483647, %v1390_v47  ;;  %vm1459_vm14 = vweird.f32 %v1390_v47 }
0x1333   : > { %1911 = vpow2.f32 %v1744_v48 }
0x1334   : > { %v1466_v59 = vor.u32 1.1754944e-38, %v1465_v53  ;;  %vm1464_vm0 = vcmp.eq.f32.partialorder %v1463_v55, 8.507059e+37 }
0x1338   : > { %v1910_v49 = vpop.eup %1909 }
0x1339   : > { %v1455_v50 = vmul.f32 %v1910_v49, %v1390_v47  ;;  %vm1460_vm6 = vweird.f32 %v1910_v49  ;;  %v1912_v56 = vpop.eup %1911 }
0x133a   : > { %vm1461_vm15 = vmor %vm1459_vm14, %vm1460_vm6  ;;  %v1388_v61 = vadd.f32 1.0, %v1912_v56 }
0x133b   : > { %v1456_v51 = vsub.f32 1.0, %v1455_v50 }
0x133c   : > { %v1303_v52 = vpop.permute.xlu1 %1302  ;;  %v1435_v27 = vand.u32 2147483648, %v1388_v61  ;;  %vm1429_vm7 = vweird.f32 %v1388_v61  ;;  %v1433_v28 = vand.u32 2147483647, %v1388_v61 }
0x133d   : > { %v1355_v41 = vadd.f32 %v1303_v52, %v1269_v34  ;;  %v1457_v54 = vmul.f32 %v1910_v49, %v1456_v51 }
0x133e   : > { %v1436_v31 = vor.u32 1.1754944e-38, %v1435_v27  ;;  %vm1434_vm9 = vcmp.eq.f32.partialorder %v1433_v28, 8.507059e+37 }
0x133f   : > { %v1743_v57 = vmul.f32 -1.442695, %v1355_v41  ;;  %v1458_v58 = vadd.f32 %v1910_v49, %v1457_v54 }
0x1341   : > { %1913 = vpow2.f32 %v1743_v57  ;;  %v1462_v60 = vsel %vm1461_vm15, %v1910_v49, %v1458_v58 }
0x1342   : > { %v1467_v62 = vsel %vm1464_vm0, %v1466_v59, %v1462_v60  ;;  %1915 = vrcp.f32 %v1388_v61 }
0x1343   : > { %1535 = vperm.xlu2 %1833, %v1467_v62  }
0x1344   : > { %v1331_v0 = vpop.permute.xlu1 %1330 }
0x1345   : > { %v1359_v1 = vadd.f32 %v1331_v0, %v1281_v63 }
0x1347   : > { %v1914_v8 = vpop.eup %1913  ;;  %v1747_v9 = vmul.f32 -1.442695, %v1359_v1 }
0x1348   : > { %v1387_v2 = vadd.f32 1.0, %v1914_v8  ;;  %v1916_v10 = vpop.eup %1915 }
0x1349   : > { %1917 = vpow2.f32 %v1747_v9  ;;  %v1425_v4 = vmul.f32 %v1916_v10, %v1388_v61  ;;  %vm1430_vm5 = vweird.f32 %v1916_v10 }
0x134a   : > { %1919 = vrcp.f32 %v1387_v2  ;;  %v1420_v15 = vand.u32 2147483648, %v1387_v2  ;;  %v1418_v16 = vand.u32 2147483647, %v1387_v2  ;;  %vm1414_vm1 = vweird.f32 %v1387_v2  ;;  %vm1431_vm8 = vmor %vm1429_vm7, %vm1430_vm5 }
0x134b   : > { %v1426_v14 = vsub.f32 1.0, %v1425_v4  ;;  %vm1556_vm5 = vcmask 1041409   ;;  %vm1558_vm7 = vcmask 1042434  }
0x134c   : > { %v1421_v20 = vor.u32 1.1754944e-38, %v1420_v15  ;;  %vm1419_vm4 = vcmp.eq.f32.partialorder %v1418_v16, 8.507059e+37 }
0x134d   : > { %v1427_v18 = vmul.f32 %v1916_v10, %v1426_v14 }
0x134f   : > { %v1918_v3 = vpop.eup %1917  ;;  %v1428_v25 = vadd.f32 %v1916_v10, %v1427_v18 }
0x1350   : > { %v1920_v5 = vpop.eup %1919  ;;  %v1391_v6 = vadd.f32 1.0, %v1918_v3  ;;  %v1533_v15 = vpop.permute.xlu0 %1532 }
0x1351   : > { %v1410_v11 = vmul.f32 %v1920_v5, %v1387_v2  ;;  %vm1415_vm2 = vweird.f32 %v1920_v5  ;;  %v1432_v29 = vsel %vm1431_vm8, %v1916_v10, %v1428_v25  ;;  %vm1560_vm8 = vcmask 1043459  }
0x1352   : > { %1921 = vrcp.f32 %v1391_v6  ;;  %vm1416_vm3 = vmor %vm1414_vm1, %vm1415_vm2  ;;  %v1437_v32 = vsel %vm1434_vm9, %v1436_v31, %v1432_v29  ;;  %v1480_v34 = vand.u32 2147483648, %v1391_v6  ;;  %vm1474_vm11 = vweird.f32 %v1391_v6 }
0x1353   : > { %v1411_v13 = vsub.f32 1.0, %v1410_v11  ;;  %v1478_v35 = vand.u32 2147483647, %v1391_v6  ;;  %vm1562_vm9 = vcmask 1044484  }
0x1354   : > { %v1481_v37 = vor.u32 1.1754944e-38, %v1480_v34 }
0x1355   : > { %v1412_v12 = vmul.f32 %v1920_v5, %v1411_v13  ;;  %vm1479_vm13 = vcmp.eq.f32.partialorder %v1478_v35, 8.507059e+37 }
0x1357   : > { %v1413_v17 = vadd.f32 %v1920_v5, %v1412_v12 }
0x1358   : > { %v1922_v19 = vpop.eup %1921 }
0x1359   : > { %v1417_v21 = vsel %vm1416_vm3, %v1920_v5, %v1413_v17  ;;  %v1470_v22 = vmul.f32 %v1922_v19, %v1391_v6  ;;  %vm1475_vm10 = vweird.f32 %v1922_v19  ;;  %v1547_v5 = vand.u32 127, %v1291_v23 }
0x135a   : > { %v1422_v24 = vsel %vm1419_vm4, %v1421_v20, %v1417_v21  ;;  %vm1476_vm12 = vmor %vm1474_vm11, %vm1475_vm10  ;;  %vm1564_vm10 = vcmask 1045509   ;;  %vm1566_vm11 = vcmask 1046534  }
0x135b   : > { %1526 = vperm.xlu1 %1831, %v1422_v24   ;;  %v1471_v26 = vsub.f32 1.0, %v1470_v22  ;;  %v1524_v10 = vpop.permute.xlu1 %1523  ;;  %v1551_v18 = vperm.slane %v1533_v15, %v1547_v5 }
0x135c   : > { %v1548_v14 = vperm.slane %v1524_v10, %v1547_v5 }
0x135d   : > { %v1472_v30 = vmul.f32 %v1922_v19, %v1471_v26 }
0x135f   : > { %v1473_v33 = vadd.f32 %v1922_v19, %v1472_v30 }
0x1361   : > { %v1477_v36 = vsel %vm1476_vm12, %v1922_v19, %v1473_v33  ;;  %vm1568_vm12 = vcmask 1047559  }
0x1362   : > { %v1482_v38 = vsel %vm1479_vm13, %v1481_v37, %v1477_v36  ;;  %vm1571_vm13 = vcmask 15360  }
0x1363   : > { %1529 = vperm.xlu1 %1831, %v1437_v32  }
0x136b   : > { %1538 = vperm.xlu1 %1831, %v1482_v38  }
0x1379   : > { %v1287_v40 = vpop.xlane.xlu2 %1286 }
0x137a   : > { %v1361_v42 = vadd.f32 %v1345_v39, %v1287_v40 }
0x137c   : > { %v1749_v43 = vmul.f32 -1.442695, %v1361_v42 }
0x137e   : > { %1923 = vpow2.f32 %v1749_v43 }
0x1381   : > { %v1338_v44 = vpop.permute.xlu2 %1337 }
0x1382   : > { %v1360_v45 = vadd.f32 %v1338_v44, %v2455_v7 }
0x1384   : > { %v1924_v46 = vpop.eup %1923  ;;  %v1748_v47 = vmul.f32 -1.442695, %v1360_v45 }
0x1385   : > { %v1393_v48 = vadd.f32 1.0, %v1924_v46 }
0x1386   : > { %1925 = vpow2.f32 %v1748_v47 }
0x1387   : > { %1927 = vrcp.f32 %v1393_v48  ;;  %v1510_v41 = vand.u32 2147483648, %v1393_v48  ;;  %v1508_v55 = vand.u32 2147483647, %v1393_v48  ;;  %vm1504_vm14 = vweird.f32 %v1393_v48 }
0x1389   : > { %v1511_v7 = vor.u32 1.1754944e-38, %v1510_v41  ;;  %vm1509_vm0 = vcmp.eq.f32.partialorder %v1508_v55, 8.507059e+37 }
0x138c   : > { %v1926_v49 = vpop.eup %1925 }
0x138d   : > { %v1928_v50 = vpop.eup %1927  ;;  %v1392_v51 = vadd.f32 1.0, %v1926_v49 }
0x138e   : > { %v1500_v52 = vmul.f32 %v1928_v50, %v1393_v48  ;;  %vm1505_vm6 = vweird.f32 %v1928_v50 }
0x138f   : > { %1929 = vrcp.f32 %v1392_v51  ;;  %vm1506_vm15 = vmor %vm1504_vm14, %vm1505_vm6  ;;  %v1495_v62 = vand.u32 2147483648, %v1392_v51  ;;  %v1493_v0 = vand.u32 2147483647, %v1392_v51  ;;  %vm1489_vm1 = vweird.f32 %v1392_v51 }
0x1390   : > { %v1501_v53 = vsub.f32 1.0, %v1500_v52 }
0x1391   : > { %v1496_v8 = vor.u32 1.1754944e-38, %v1495_v62  ;;  %vm1494_vm4 = vcmp.eq.f32.partialorder %v1493_v0, 8.507059e+37 }
0x1392   : > { %v1502_v54 = vmul.f32 %v1928_v50, %v1501_v53 }
0x1394   : > { %v1503_v56 = vadd.f32 %v1928_v50, %v1502_v54 }
0x1395   : > { %v1930_v57 = vpop.eup %1929 }
0x1396   : > { %v1507_v58 = vsel %vm1506_vm15, %v1928_v50, %v1503_v56  ;;  %v1485_v59 = vmul.f32 %v1930_v57, %v1392_v51  ;;  %vm1490_vm2 = vweird.f32 %v1930_v57 }
0x1397   : > { %v1512_v60 = vsel %vm1509_vm0, %v1511_v7, %v1507_v58  ;;  %vm1491_vm3 = vmor %vm1489_vm1, %vm1490_vm2 }
0x1398   : > { %1544 = vperm.xlu1 %1831, %v1512_v60   ;;  %v1486_v61 = vsub.f32 1.0, %v1485_v59 }
0x139a   : > { %v1487_v63 = vmul.f32 %v1930_v57, %v1486_v61 }
0x139c   : > { %v1488_v1 = vadd.f32 %v1930_v57, %v1487_v63 }
0x139d   : > { %v1536_v6 = vpop.permute.xlu2 %1535 }
0x139e   : > { %v1492_v9 = vsel %vm1491_vm3, %v1930_v57, %v1488_v1  ;;  %v1552_v22 = vperm.slane %v1536_v6, %v1547_v5 }
0x139f   : > { %v1497_v2 = vsel %vm1494_vm4, %v1496_v8, %v1492_v9 }
0x13a0   : > { %1541 = vperm.xlu2 %1833, %v1497_v2  }
0x13cd   : > { %v1527_v3 = vpop.permute.xlu1 %1526 }
0x13ce   : > { %v1549_v11 = vperm.slane %v1527_v3, %v1547_v5 }
0x13d0   : > { %v1557_v16 = vsel %vm1556_vm5, %v1549_v11, %v1548_v14 }
0x13d5   : > { %v1530_v4 = vpop.permute.xlu1 %1529 }
0x13d6   : > { %v1550_v13 = vperm.slane %v1530_v4, %v1547_v5 }
0x13d8   : > { %v1559_v17 = vsel %vm1558_vm7, %v1550_v13, %v1557_v16 }
0x13d9   : > { %v1561_v20 = vsel %vm1560_vm8, %v1551_v18, %v1559_v17 }
0x13da   : > { %v1563_v24 = vsel %vm1562_vm9, %v1552_v22, %v1561_v20 }
0x13dd   : > { %v1539_v12 = vpop.permute.xlu1 %1538 }
0x13de   : > { %v1553_v21 = vperm.slane %v1539_v12, %v1547_v5 }
0x13e0   : > { %v1565_v26 = vsel %vm1564_vm10, %v1553_v21, %v1563_v24 }
0x13fa   : > { %v1542_v19 = vpop.permute.xlu2 %1541 }
0x13fb   : > { %v1554_v23 = vperm.slane %v1542_v19, %v1547_v5 }
0x13fd   : > { %v1567_v28 = vsel %vm1566_vm11, %v1554_v23, %v1565_v26 }
0x140a   : > { %v1545_v25 = vpop.permute.xlu1 %1544 }
0x140b   : > { %v1555_v27 = vperm.slane %v1545_v25, %v1547_v5 }
0x140d   : > { %v1569_v29 = vsel %vm1568_vm12, %v1555_v27, %v1567_v28 }
0x140e   : > { %1572 = vst.msk [vmem:[%s2278_s18] sm:$0xff] %vm1571_vm13, %v1569_v29 }
0x140f PF: > { %p20_p1 = scmp.ge.s32.totalorder %s2188_s16, 4   ;;  %s2499_s21 = smov %s2085_s22 }
0x1410   : > { %s2500_s22 = smov %s2089_s23  ;;  %s2501_s23 = smov %s2201_s20 }
0x1411   : > { %s2502_s24 = smov %s2188_s16  ;;  %22 = sbr.rel (!%p20_p1) target bundleno = 9 (0x9), region = 133 }
0x1416   :  { %1592 = vsyncpa [#allocation7], 1 }
0x1417   :  { %1594 = vsyncpa [#allocation7 + $0x1], 1 }
0x1418   :  { %1595 = vsyncpa [#allocation9], 1 }
0x1419   :  { %1596 = vsyncpa [#allocation12], 1 }
0x141a   :  { %1598 = vsyncpa [#allocation12 + $0x1], 1 }

</bundles_post_ra>
